<compile_context>
chip_gen: v6e
topology: v6e:2x2x1
jax: 0.10.0
libtpu: 0.0.40
codegen_flags: <defaults>
</compile_context>

<pallas_src>
import math

import jax
import jax.numpy as jnp
from jax.experimental import pallas as pl
from jax.experimental.pallas import tpu as pltpu


def _round_up(x: int, m: int) -> int:
    return ((x + m - 1) // m) * m


def _make_mlp_kernel(use_bf16_matmul: bool):
    compute_dtype = jnp.bfloat16 if use_bf16_matmul else jnp.float32

    def mlp_kernel(x_ref, w1_ref, b1_ref, w2_ref, b2_ref, o_ref):
        x = x_ref[...].astype(compute_dtype)

        # Linear 1 + ReLU
        h = jnp.dot(x, w1_ref[...].astype(compute_dtype),
                    preferred_element_type=jnp.float32)
        h = jnp.maximum(h + b1_ref[...], 0.0)

        # nn.Dropout is identity in eval mode.
        # TODO(synk): training-mode stochastic dropout (pltpu.prng_*) not implemented.

        # Linear 2
        out = jnp.dot(h.astype(compute_dtype), w2_ref[...].astype(compute_dtype),
                      preferred_element_type=jnp.float32)
        out = out + b2_ref[...]

        o_ref[...] = out.astype(o_ref.dtype)

    return mlp_kernel


def linear_modality_encoder(x, params, *, block_b=256,
                            vmem_budget_bytes=12 * 1024 * 1024,
                            use_bf16_matmul=False):
    """Forward pass of LinearModalityEncoder via one Pallas call (batch-tiled)."""
    w1, b1, w2, b2 = params
    B, Din = x.shape
    Dout = w1.shape[1]

    # Lane-dense padding: last dims -> multiples of 128 (unmasked stores, aligned MXU tiles).
    Din_p = _round_up(Din, 128)
    Dout_p = _round_up(Dout, 128)

    # Batch tile: as big as allowed by a conservative VMEM budget (safe even for
    # v7x's 64 MiB physical VMEM / smaller scoped default); always a multiple of 8.
    tb = max(8, min(_round_up(block_b, 8), _round_up(B, 8)))
    weight_bytes = 2 * 4 * (Din_p * Dout_p + Dout_p * Dout_p + 2 * Dout_p)
    while tb > 8:
        act_bytes = 4 * (2 * tb * Din_p + 2 * tb * Dout_p   # double-buffered x / out tiles
                         + 2 * tb * Dout_p)                 # f32 intermediates (h, out)
        if weight_bytes + act_bytes <= vmem_budget_bytes:
            break
        tb = max(8, _round_up(tb // 2, 8))

    num_tiles = pl.cdiv(B, tb)
    B_p = num_tiles * tb

    # Zero padding is exact through bias + ReLU; padded rows/cols are sliced off below.
    x_p = jnp.pad(x.astype(jnp.float32), ((0, B_p - B), (0, Din_p - Din)))
    w1_p = jnp.pad(w1, ((0, Din_p - Din), (0, Dout_p - Dout)))
    b1_p = jnp.pad(b1, ((0, 0), (0, Dout_p - Dout)))
    w2_p = jnp.pad(w2, ((0, Dout_p - Dout), (0, Dout_p - Dout)))
    b2_p = jnp.pad(b2, ((0, 0), (0, Dout_p - Dout)))

    out_p = pl.pallas_call(
        _make_mlp_kernel(use_bf16_matmul),
        out_shape=jax.ShapeDtypeStruct((B_p, Dout_p), jnp.float32),
        grid_spec=pltpu.PrefetchScalarGridSpec(
            num_scalar_prefetch=0,
            grid=(num_tiles,),
            in_specs=[
                pl.BlockSpec((tb, Din_p), lambda i: (i, 0)),       # x: batch-tiled
                pl.BlockSpec((Din_p, Dout_p), lambda i: (0, 0)),   # W1: VMEM-resident
                pl.BlockSpec((1, Dout_p), lambda i: (0, 0)),       # b1
                pl.BlockSpec((Dout_p, Dout_p), lambda i: (0, 0)),  # W2: VMEM-resident
                pl.BlockSpec((1, Dout_p), lambda i: (0, 0)),       # b2
            ],
            out_specs=pl.BlockSpec((tb, Dout_p), lambda i: (i, 0)),
        ),
        compiler_params=pltpu.CompilerParams(
            dimension_semantics=("parallel",),   # shard batch tiles across TCs (v7x megacore)
        ),
    )(x_p, w1_p, b1_p, w2_p, b2_p)

    return out_p[:B, :Dout]


def reference(x, params):
    """Pure-JAX reference of the same forward (for validation)."""
    w1, b1, w2, b2 = params
    h = jnp.maximum(x @ w1 + b1, 0.0)
    return h @ w2 + b2


def init_params(key, input_dim, output_dim):
    """Deterministic parameter init; shapes mirror the PyTorch module ([in, out] layout)."""
    ks = jax.random.split(key, 4)
    w1 = jax.random.normal(ks[0], (input_dim, output_dim), jnp.float32) / math.sqrt(input_dim)
    b1 = jax.random.normal(ks[1], (1, output_dim), jnp.float32) * 0.01
    w2 = jax.random.normal(ks[2], (output_dim, output_dim), jnp.float32) / math.sqrt(output_dim)
    b2 = jax.random.normal(ks[3], (1, output_dim), jnp.float32) * 0.01
    return (w1, b1, w2, b2)


if __name__ == "__main__":
    key = jax.random.PRNGKey(0)

    # Case 1: aligned CLIP-like shapes -> exercises the batch grid (multiple tiles).
    # Case 2: small unaligned shapes   -> exercises the lane-dense padding path.
    cases = [(256, 512, 256), (8, 200, 80)]

    for (B, Din, Dout) in cases:
        key, k_x, k_p = jax.random.split(key, 3)
        x = jax.random.normal(k_x, (B, Din), jnp.float32)
        params = init_params(k_p, Din, Dout)

        out = linear_modality_encoder(x, params, block_b=128)
        out = jax.block_until_ready(out)

        ref = reference(x, params)
        assert out.shape == (B, Dout), (out.shape, (B, Dout))
        assert jnp.allclose(out, ref, atol=1e-4, rtol=1e-4), (B, Din, Dout)

    print("KERNEL_OK")
</pallas_src>

<mosaic_0001>
module attributes {stable_mosaic.version = 11 : i64} {
  func.func @mlp_kernel(%arg0: i32, %arg1: memref<128x512xf32, #tpu.memory_space<vmem>>, %arg2: memref<512x256xf32, #tpu.memory_space<vmem>>, %arg3: memref<1x256xf32, #tpu.memory_space<vmem>>, %arg4: memref<256x256xf32, #tpu.memory_space<vmem>>, %arg5: memref<1x256xf32, #tpu.memory_space<vmem>>, %arg6: memref<128x256xf32, #tpu.memory_space<vmem>>) attributes {dimension_semantics = [#tpu.dimension_semantics<parallel>], iteration_bounds = array<i64: 2>, scalar_prefetch = 0 : i64, scratch_operands = 0 : i64, tpu.core_type = #tpu.core_type<tc>, window_params = [{transform_indices = @transform_0, window_bounds = array<i64: 128, 512>}, {pipeline_mode = #tpu.pipeline_mode<synchronous>, transform_indices = @transform_1, window_bounds = array<i64: 512, 256>}, {pipeline_mode = #tpu.pipeline_mode<synchronous>, transform_indices = @transform_2, window_bounds = array<i64: 1, 256>}, {pipeline_mode = #tpu.pipeline_mode<synchronous>, transform_indices = @transform_3, window_bounds = array<i64: 256, 256>}, {pipeline_mode = #tpu.pipeline_mode<synchronous>, transform_indices = @transform_4, window_bounds = array<i64: 1, 256>}, {transform_indices = @transform_5, window_bounds = array<i64: 128, 256>}]} {
    %c0 = arith.constant 0 : index
    %c0_0 = arith.constant 0 : index
    %0 = vector.load %arg1[%c0, %c0_0] : memref<128x512xf32, #tpu.memory_space<vmem>>, vector<128x512xf32>
    %c0_1 = arith.constant 0 : index
    %c0_2 = arith.constant 0 : index
    %1 = vector.load %arg2[%c0_1, %c0_2] : memref<512x256xf32, #tpu.memory_space<vmem>>, vector<512x256xf32>
    %cst = arith.constant dense<0.000000e+00> : vector<128x256xf32>
    %2 = tpu.matmul %0, %1, %cst {dimension_numbers = #tpu.dot_dimension_numbers<[1], [0], [0], [1], [0, 0, 1, 1], [], []>} : vector<128x512xf32>, vector<512x256xf32>, vector<128x256xf32> -> vector<128x256xf32>
    %c0_3 = arith.constant 0 : index
    %c0_4 = arith.constant 0 : index
    %3 = vector.load %arg3[%c0_3, %c0_4] : memref<1x256xf32, #tpu.memory_space<vmem>>, vector<1x256xf32>
    %4 = vector.broadcast %3 : vector<1x256xf32> to vector<128x256xf32>
    %5 = arith.addf %2, %4 : vector<128x256xf32>
    %cst_5 = arith.constant 0.000000e+00 : f32
    %6 = vector.broadcast %cst_5 : f32 to vector<128x256xf32>
    %7 = arith.maximumf %5, %6 : vector<128x256xf32>
    %c0_6 = arith.constant 0 : index
    %c0_7 = arith.constant 0 : index
    %8 = vector.load %arg4[%c0_6, %c0_7] : memref<256x256xf32, #tpu.memory_space<vmem>>, vector<256x256xf32>
    %cst_8 = arith.constant dense<0.000000e+00> : vector<128x256xf32>
    %9 = tpu.matmul %7, %8, %cst_8 {dimension_numbers = #tpu.dot_dimension_numbers<[1], [0], [0], [1], [0, 0, 1, 1], [], []>} : vector<128x256xf32>, vector<256x256xf32>, vector<128x256xf32> -> vector<128x256xf32>
    %c0_9 = arith.constant 0 : index
    %c0_10 = arith.constant 0 : index
    %10 = vector.load %arg5[%c0_9, %c0_10] : memref<1x256xf32, #tpu.memory_space<vmem>>, vector<1x256xf32>
    %11 = vector.broadcast %10 : vector<1x256xf32> to vector<128x256xf32>
    %12 = arith.addf %9, %11 : vector<128x256xf32>
    %c0_11 = arith.constant 0 : index
    %c0_12 = arith.constant 0 : index
    %13 = vector.load %arg6[%c0_11, %c0_12] : memref<128x256xf32, #tpu.memory_space<vmem>>, vector<128x256xf32>
    tpu.vector_store %arg6[%c0_11, %c0_12], %12 {strides = array<i32>} : memref<128x256xf32, #tpu.memory_space<vmem>>, vector<128x256xf32>,
    return
  }
  func.func @transform_0(%arg0: i32) -> (i32, i32) {
    %c0_i32 = arith.constant 0 : i32
    %c0_i32_0 = arith.constant 0 : i32
    return %arg0, %c0_i32 : i32, i32
  }
  func.func @transform_1(%arg0: i32) -> (i32, i32) {
    %c0_i32 = arith.constant 0 : i32
    %c0_i32_0 = arith.constant 0 : i32
    %c0_i32_1 = arith.constant 0 : i32
    return %c0_i32, %c0_i32_0 : i32, i32
  }
  func.func @transform_2(%arg0: i32) -> (i32, i32) {
    %c0_i32 = arith.constant 0 : i32
    %c0_i32_0 = arith.constant 0 : i32
    %c0_i32_1 = arith.constant 0 : i32
    return %c0_i32, %c0_i32_0 : i32, i32
  }
  func.func @transform_3(%arg0: i32) -> (i32, i32) {
    %c0_i32 = arith.constant 0 : i32
    %c0_i32_0 = arith.constant 0 : i32
    %c0_i32_1 = arith.constant 0 : i32
    return %c0_i32, %c0_i32_0 : i32, i32
  }
  func.func @transform_4(%arg0: i32) -> (i32, i32) {
    %c0_i32 = arith.constant 0 : i32
    %c0_i32_0 = arith.constant 0 : i32
    %c0_i32_1 = arith.constant 0 : i32
    return %c0_i32, %c0_i32_0 : i32, i32
  }
  func.func @transform_5(%arg0: i32) -> (i32, i32) {
    %c0_i32 = arith.constant 0 : i32
    %c0_i32_0 = arith.constant 0 : i32
    return %arg0, %c0_i32 : i32, i32
  }
}

</mosaic_0001>

<bundles_post_ra>
// kernel: tpu_custom_call.1
= control target key start
LH: loop header
LB: loop body
LE: loop exit
PB: predicated region body
PF: predicated region fallthrough
CT: control target
= control target key end

     0   :  { %10 = vsyncpa [#allocation3], 0  ;;  %s1940_s0 = inlined_call_operand.hbm [shape: f32[256,512], index: 0, kind: input, shape index: {}]   ;;  %s1941_s1 = inlined_call_operand.hbm [shape: f32[512,256], index: 1, kind: input, shape index: {}]   ;;  %s1942_s2 = inlined_call_operand.vmem [shape: f32[1,256], index: 2, kind: input, shape index: {}]   ;;  %s1943_s3 = inlined_call_operand.hbm [shape: f32[256,256], index: 3, kind: input, shape index: {}]   ;;  %s1944_s4 = inlined_call_operand.vmem [shape: f32[1,256], index: 4, kind: input, shape index: {}]   ;;  %s1945_s5 = inlined_call_operand.hbm [shape: f32[256,256], index: 5, kind: output, shape index: {}]  }
   0x1   :  { %12 = vsyncpa [#allocation3 + $0x1], 0 }
   0x2   :  { %13 = vsyncpa [#allocation6], 0 }
   0x3   :  { %14 = vsyncpa [#allocation4], 0 }
   0x4   :  { %16 = vsyncpa [#allocation4 + $0x1], 0  ;;  %s1560_s18 = smov 0   ;;  %s1562_s19 = smov 0  }
   0x5   :  { %s1564_s20 = smov 0   ;;  %s1566_s21 = smov 0  }
   0x6 LB: > { %s1581_s22 = sadd.s32 4294967295, %s1518_s21   ;;  %s1209_s23 = sadd.s32 4294967294, %s1518_s21   ;;  %s1518_s21 = sphi %s1566_s21, %s1967_s21   ;;  %s1514_s20 = sphi %s1564_s20, %s1966_s20   ;;  %s1510_s19 = sphi %s1562_s19, %s1965_s19   ;;  %s1506_s18 = sphi %s1560_s18, %s1964_s18  }
   0x7   : > { %p42_p0 = scmp.ne.s32.totalorder %s1510_s19, %s1506_s18  ;;  %p1946_p1 = scmp.eq.s32.totalorder %s1581_s22, 0 }
   0x8   : > { %p156_p3 = scmp.eq.s32.totalorder %s1209_s23, 1  ;;  %p1210_p5 = scmp.ge.s32.totalorder %s1518_s21, 1 }
   0x9   : > { %p1590_p4 = por %p1946_p1, %p42_p0  ;;  %p163_p7 = scmp.lt.s32.totalorder %s1518_s21, 3 }
   0xa   : > { %p1595_p6 = por %p156_p3, %p42_p0  ;;  %s1520_s27 = smov [#allocation5]  }
   0xb   : > { %s1950_s24 = scalar_select %p1590_p4, 1, 0 }
   0xc   : > { %s1951_s25 = scalar_select %p1595_p6, 1, 0 }
   0xd   : > { %p1600_p8 = pnand %p1210_p5, %p163_p7  ;;  %s175_s28 = sshll.u32 %s1520_s27, 4  ;;  %s176_s28 = int_to_ptr.vmem [resolvable:$true] %s175_s28 }
   0xe   : > { %s1521_s30 = smov [#allocation7]   ;;  %s1381_s7 = scalar_lea.vmem %s176_s28, 16384 }
   0xf   : > { %s1952_s26 = scalar_select %p1600_p8, 1, 0 }
  0x10   : > { %p1309_p9 = pneg %p1600_p8  ;;  %s191_s6 = sshll.u32 %s1521_s30, 4  ;;  %s192_s6 = int_to_ptr.vmem [resolvable:$true] %s191_s6 }
  0x11   : > { %p1382_p13 = scmp.ne.s32.totalorder %s176_s28, %s1381_s7  ;;  %p1389_p5 = scmp.lt.s32.totalorder %s176_s28, %s176_s28 }
  0x12   : > { %p1609_p11 = pnand %p1309_p9, %p1946_p1  ;;  %p1390_p7 = scmp.lt.s32.totalorder %s1381_s7, %s1381_s7 }
  0x14   : > { %p1372_p12 = pneg %p1609_p11  ;;  %p1391_p10 = por %p1390_p7, %p1389_p5 }
  0x16   : > { %p1384_p0 = pnand %p1382_p13, %p1372_p12 }
  0x18   : > { %p1385_p3 = pneg %p1384_p0 }
  0x1a   : > { %p1392_p9 = pnand %p1391_p10, %p1385_p3 }
  0x1c   : > { %1395 = shalt.err (!%p1392_p9)
}
  0x1d   : > { %s1522_s8 = smov 256   ;;  %s1523_s9 = smov 16  }
  0x1e   : > { %1312 = dma.hbm_to_vmem [thread:$0]  (!%p1609_p11), %s1941_s1, 16384, %s176_s28, [#allocation6], %s1522_s8, %s1522_s8, %s1523_s9  }
  0x1f   : > { %s1407_s12 = scalar_lea.vmem %s192_s6, 8192  ;;  %p1415_p2 = scmp.lt.s32.totalorder %s192_s6, %s192_s6 }
  0x20   : > { %p1408_p1 = scmp.ne.s32.totalorder %s192_s6, %s1407_s12  ;;  %p1416_p6 = scmp.lt.s32.totalorder %s1407_s12, %s1407_s12 }
  0x22   : > { %p1410_p13 = pnand %p1408_p1, %p1372_p12  ;;  %p1417_p5 = por %p1416_p6, %p1415_p2 }
  0x24   : > { %p1411_p0 = pneg %p1410_p13 }
  0x26   : > { %p1418_p10 = pnand %p1417_p5, %p1411_p0 }
  0x28   : > { %1421 = shalt.err (!%p1418_p10)
}
  0x29   : > { %1315 = dma.hbm_to_vmem [thread:$0]  (!%p1609_p11), %s1943_s3, 8192, %s192_s6, [#allocation6], %s1522_s8, %s1522_s8, %s1523_s9  }
  0x2a   : > { %s1632_s15 = sadd.s32 1, %s1518_s21   ;;  %s29_s16 = sadd.s32 1, %s1514_s20 }
  0x2b   : > { %s26_s17 = ssub.s32 %s1518_s21, %s1632_s15  ;;  %p36_p1 = scmp.ne.s32.totalorder %s1514_s20, %s1510_s19 }
  0x2c   : > { %p27_p2 = scmp.eq.s32.totalorder %s26_s17, 0  ;;  %p37_p6 = scmp.eq.s32.totalorder %s1518_s21, 0 }
  0x2d   : > { %p1954_p12 = scmp.eq.s32.totalorder %s1581_s22, 1  ;;  %p1326_p7 = scmp.lt.s32.totalorder %s1518_s21, 2 }
  0x2e   : > { %s1648_s27 = scalar_select %p27_p2, %s1514_s20, %s29_s16  }
  0x2f   : > { %p1642_p3 = por %p1954_p12, %p36_p1  ;;  %p38_p9 = por %p37_p6, %p36_p1 }
  0x30   : > { %s208_s28 = sand.u32 1, %s1514_s20   ;;  %s1230_s30 = sshll.u32 %s1518_s21, 13 }
  0x31   : > { %s1955_s23 = scalar_select %p1642_p3, 1, 0 }
  0x32   : > { %s1214_s29 = sshll.u32 %s208_s28, 9  ;;  %s1655_s8 = scalar_lea.hbm %s1940_s0, %s1230_s30 }
  0x33   : > { %s212_s9 = scalar_lea.vmem [#allocation2], %s1214_s29  ;;  %p1659_p11 = pnand %p1326_p7, %p38_p9 }
  0x34   : > { %s220_s10 = sshll.u32 %s212_s9, 4  ;;  %s1663_s12 = scalar_lea.sflag [#allocation3], %s208_s28  ;;  %s1657_s10 = int_to_ptr.vmem [resolvable:$true] %s220_s10 }
  0x35   : > { %s1422_s13 = scalar_lea.hbm %s1655_s8, 8192  ;;  %p1424_p0 = pneg %p1659_p11 }
  0x36   : > { %p1423_p13 = scmp.ne.s32.totalorder %s1655_s8, %s1422_s13  ;;  %s1427_s17 = scalar_lea.hbm %s1940_s0, 16384 }
  0x37   : > { %p1428_p1 = scmp.lt.s32.totalorder %s1655_s8, %s1940_s0  ;;  %p1429_p2 = scmp.lt.s32.totalorder %s1427_s17, %s1422_s13 }
  0x38   : > { %p1425_p5 = pnand %p1424_p0, %p1423_p13 }
  0x39   : > { %p1430_p6 = por %p1429_p2, %p1428_p1 }
  0x3a   : > { %p1426_p10 = pneg %p1425_p5 }
  0x3c   : > { %p1431_p12 = pnand %p1430_p6, %p1426_p10 }
  0x3e   : > { %1434 = shalt.err (!%p1431_p12)
}
  0x3f   : > { %s1435_s28 = scalar_lea.vmem %s1657_s10, 8192  ;;  %s1524_s6 = smov [#allocation2]  }
  0x40   : > { %p1436_p7 = scmp.ne.s32.totalorder %s1657_s10, %s1435_s28  ;;  %s1440_s7 = sshll.u32 %s1524_s6, 4  ;;  %s1441_s7 = int_to_ptr.vmem [resolvable:$false] %s1440_s7 }
  0x41   : > { %s1442_s9 = scalar_lea.vmem %s1441_s7, 16384  ;;  %p1443_p5 = scmp.lt.s32.totalorder %s1657_s10, %s1441_s7 }
  0x42   : > { %p1438_p9 = pnand %p1436_p7, %p1424_p0  ;;  %p1444_p3 = scmp.lt.s32.totalorder %s1442_s9, %s1435_s28 }
  0x44   : > { %p1439_p13 = pneg %p1438_p9  ;;  %p1445_p4 = por %p1444_p3, %p1443_p5 }
  0x46   : > { %p1446_p8 = pnand %p1445_p4, %p1439_p13 }
  0x48   : > { %1449 = shalt.err (!%p1446_p8)
}
  0x49   : > { %s1525_s13 = smov 512   ;;  %s1526_s14 = smov 32  }
  0x4a   : > { %1319 = dma.hbm_to_vmem [thread:$0]  (!%p1659_p11), %s1655_s8, 8192, %s1657_s10, %s1663_s12, %s1525_s13, %s1525_s13, %s1526_s14  }
  0x4b   : > { %p1957_p0 = scmp.ne.s32.totalorder %s1952_s26, 0 }
  0x4c   : > { %s1687_s16 = sand.u32 (!%p1957_p0), 1, %s1510_s19   ;;  %p1958_p4 = scmp.ne.s32.totalorder (!%p1957_p0), %s1950_s24, 0 }
  0x4d   : > { %232 = sbr.rel (%p1957_p0) target bundleno = 625 (0x271), region = 40  ;;  %s1219_s17 = sshll.u32 (!%p1957_p0), %s1687_s16, 9 }
  0x4e   : > { %s235_s29 = scalar_lea.sflag (!%p1957_p0), [#allocation3], %s1687_s16  ;;  %s1691_s30 = scalar_lea.vmem (!%p1957_p0), [#allocation2], %s1219_s17 }
  0x52   : > { %1493 = dma.done.wait (%p1958_p4), %s235_s29, 8192  }
  0x53   : > { %1495 = vsyncadd (%p1958_p4), %s235_s29, 4294959104  ;;  %p1959_p8 = scmp.eq.s32.totalorder %s1581_s22, 0 }
  0x55   : > { %1497 = dma.done.wait (%p1959_p8), [#allocation6], 24576   ;;  %p1960_p3 = pmov %p1959_p8 }
  0x56   : > { %v370_v0 = vld [vmem:[#allocation5 + $0xf8] sm:$0xff]  ;;  %v369_v2 = vld [vmem:[#allocation5 + $0xf0] sm:$0xff]  ;;  %v368_v4 = vld [vmem:[#allocation5 + $0xe8] sm:$0xff]  ;;  %s1222_s11 = sshll.u32 %s1687_s16, 8  ;;  %s1232_s28 = sshll.u32 %s1581_s22, 12 }
  0x57   : > { %1499 = vsyncadd (%p1960_p3), [#allocation6], 4294942720  ;;  %v434_v1 = vld [vmem:[#allocation5 + $0x2f8] sm:$0xff]  ;;  %479 = vmatprep.subr.mxu0 %v370_v0  ;;  %v433_v3 = vld [vmem:[#allocation5 + $0x2f0] sm:$0xff]  ;;  %s1825_s12 = scalar_lea.vmem [#allocation8], %s1222_s11  ;;  %s1892_s13 = scalar_lea.hbm %s1945_s5, %s1232_s28 }
  0x58   : > { %640 = vmatprep.subr.mxu1 %v434_v1  ;;  %v432_v5 = vld [vmem:[#allocation5 + $0x2e8] sm:$0xff]  ;;  %480 = vmatpush1.msra.mxu0 %v369_v2  ;;  %v367_v6 = vld [vmem:[#allocation5 + $0xe0] sm:$0xff]  ;;  %v366_v8 = vld [vmem:[#allocation5 + $0xd8] sm:$0xff]  ;;  %s1117_s6 = sshll.u32 %s1825_s12, 4  ;;  %s1103_s22 = scalar_lea.sflag [#allocation4], %s1687_s16  ;;  %s1894_s6 = int_to_ptr.vmem [resolvable:$true] %s1117_s6 }
  0x59   : > { %641 = vmatpush1.msra.mxu1 %v433_v3  ;;  %v431_v7 = vld [vmem:[#allocation5 + $0x2e0] sm:$0xff]  ;;  %481 = vmatprep.subr.mxu0 %v368_v4  ;;  %v430_v9 = vld [vmem:[#allocation5 + $0x2d8] sm:$0xff]  ;;  %v365_v10 = vld [vmem:[#allocation5 + $0xd0] sm:$0xff]  ;;  %s1450_s14 = scalar_lea.vmem %s1894_s6, 4096  ;;  %p1961_p10 = scmp.ne.s32.totalorder %s1955_s23, 0 }
  0x5a   : > { %642 = vmatprep.subr.mxu1 %v432_v5  ;;  %v429_v11 = vld [vmem:[#allocation5 + $0x2d0] sm:$0xff]  ;;  %482 = vmatpush1.msra.mxu0 %v367_v6  ;;  %v364_v12 = vld [vmem:[#allocation5 + $0xc8] sm:$0xff]  ;;  %v363_v14 = vld [vmem:[#allocation5 + $0xc0] sm:$0xff]  ;;  %p1451_p11 = scmp.ne.s32.totalorder %s1894_s6, %s1450_s14  ;;  %s1527_s17 = smov [#allocation8]  }
  0x5b   : > { %643 = vmatpush1.msra.mxu1 %v431_v7  ;;  %v428_v13 = vld [vmem:[#allocation5 + $0x2c8] sm:$0xff]  ;;  %483 = vmatprep.subr.mxu0 %v366_v8  ;;  %v427_v15 = vld [vmem:[#allocation5 + $0x2c0] sm:$0xff]  ;;  %v362_v16 = vld [vmem:[#allocation5 + $0xb8] sm:$0xff]  ;;  %s1454_s29 = sshll.u32 %s1527_s17, 4  ;;  %s1455_s29 = int_to_ptr.vmem [resolvable:$false] %s1454_s29 }
  0x5c   : > { %644 = vmatprep.subr.mxu1 %v430_v9  ;;  %484 = vmatpush1.msra.mxu0 %v365_v10  ;;  %v426_v17 = vld [vmem:[#allocation5 + $0x2b8] sm:$0xff]  ;;  %v361_v18 = vld [vmem:[#allocation5 + $0xb0] sm:$0xff]  ;;  %v360_v20 = vld [vmem:[#allocation5 + $0xa8] sm:$0xff]  ;;  %p1452_p1 = pnand %p1451_p11, %p1961_p10  ;;  %p1457_p6 = scmp.lt.s32.totalorder %s1894_s6, %s1455_s29 }
  0x5d   : > { %645 = vmatpush1.msra.mxu1 %v429_v11  ;;  %485 = vmatprep.subr.mxu0 %v364_v12  ;;  %v425_v19 = vld [vmem:[#allocation5 + $0x2b0] sm:$0xff]  ;;  %v424_v21 = vld [vmem:[#allocation5 + $0x2a8] sm:$0xff]  ;;  %v359_v22 = vld [vmem:[#allocation5 + $0xa0] sm:$0xff] }
  0x5e   : > { %646 = vmatprep.subr.mxu1 %v428_v13  ;;  %486 = vmatpush1.msra.mxu0 %v363_v14  ;;  %v423_v23 = vld [vmem:[#allocation5 + $0x2a0] sm:$0xff]  ;;  %v358_v24 = vld [vmem:[#allocation5 + $0x98] sm:$0xff]  ;;  %v357_v26 = vld [vmem:[#allocation5 + $0x90] sm:$0xff]  ;;  %p1453_p2 = pneg %p1452_p1 }
  0x5f   : > { %647 = vmatpush1.msra.mxu1 %v427_v15  ;;  %487 = vmatprep.subr.mxu0 %v362_v16  ;;  %v422_v25 = vld [vmem:[#allocation5 + $0x298] sm:$0xff]  ;;  %v421_v27 = vld [vmem:[#allocation5 + $0x290] sm:$0xff]  ;;  %v356_v28 = vld [vmem:[#allocation5 + $0x88] sm:$0xff] }
  0x60   : > { %648 = vmatprep.subr.mxu1 %v426_v17  ;;  %488 = vmatpush1.msra.mxu0 %v361_v18  ;;  %v420_v29 = vld [vmem:[#allocation5 + $0x288] sm:$0xff]  ;;  %v355_v30 = vld [vmem:[#allocation5 + $0x80] sm:$0xff]  ;;  %v354_v32 = vld [vmem:[#allocation5 + $0x78] sm:$0xff] }
  0x61   : > { %649 = vmatpush1.msra.mxu1 %v425_v19  ;;  %489 = vmatprep.subr.mxu0 %v360_v20  ;;  %v419_v31 = vld [vmem:[#allocation5 + $0x280] sm:$0xff]  ;;  %v418_v33 = vld [vmem:[#allocation5 + $0x278] sm:$0xff]  ;;  %v353_v34 = vld [vmem:[#allocation5 + $0x70] sm:$0xff] }
  0x62   : > { %650 = vmatprep.subr.mxu1 %v424_v21  ;;  %490 = vmatpush1.msra.mxu0 %v359_v22  ;;  %v417_v35 = vld [vmem:[#allocation5 + $0x270] sm:$0xff]  ;;  %v352_v36 = vld [vmem:[#allocation5 + $0x68] sm:$0xff]  ;;  %v351_v38 = vld [vmem:[#allocation5 + $0x60] sm:$0xff] }
  0x63   : > { %651 = vmatpush1.msra.mxu1 %v423_v23  ;;  %491 = vmatprep.subr.mxu0 %v358_v24  ;;  %v416_v37 = vld [vmem:[#allocation5 + $0x268] sm:$0xff]  ;;  %v415_v39 = vld [vmem:[#allocation5 + $0x260] sm:$0xff]  ;;  %v350_v40 = vld [vmem:[#allocation5 + $0x58] sm:$0xff] }
  0x64   : > { %652 = vmatprep.subr.mxu1 %v422_v25  ;;  %492 = vmatpush1.msra.mxu0 %v357_v26  ;;  %v414_v41 = vld [vmem:[#allocation5 + $0x258] sm:$0xff]  ;;  %v349_v42 = vld [vmem:[#allocation5 + $0x50] sm:$0xff]  ;;  %v348_v44 = vld [vmem:[#allocation5 + $0x48] sm:$0xff] }
  0x65   : > { %653 = vmatpush1.msra.mxu1 %v421_v27  ;;  %493 = vmatprep.subr.mxu0 %v356_v28  ;;  %v413_v43 = vld [vmem:[#allocation5 + $0x250] sm:$0xff]  ;;  %v412_v45 = vld [vmem:[#allocation5 + $0x248] sm:$0xff]  ;;  %v347_v46 = vld [vmem:[#allocation5 + $0x40] sm:$0xff] }
  0x66   : > { %654 = vmatprep.subr.mxu1 %v420_v29  ;;  %494 = vmatpush1.msra.mxu0 %v355_v30  ;;  %v411_v47 = vld [vmem:[#allocation5 + $0x240] sm:$0xff]  ;;  %v346_v48 = vld [vmem:[#allocation5 + $0x38] sm:$0xff]  ;;  %v345_v50 = vld [vmem:[#allocation5 + $0x30] sm:$0xff] }
  0x67   : > { %655 = vmatpush1.msra.mxu1 %v419_v31  ;;  %495 = vmatprep.subr.mxu0 %v354_v32  ;;  %v410_v49 = vld [vmem:[#allocation5 + $0x238] sm:$0xff]  ;;  %v409_v51 = vld [vmem:[#allocation5 + $0x230] sm:$0xff]  ;;  %v344_v52 = vld [vmem:[#allocation5 + $0x28] sm:$0xff] }
  0x68   : > { %656 = vmatprep.subr.mxu1 %v418_v33  ;;  %496 = vmatpush1.msra.mxu0 %v353_v34  ;;  %v408_v53 = vld [vmem:[#allocation5 + $0x228] sm:$0xff]  ;;  %v343_v54 = vld [vmem:[#allocation5 + $0x20] sm:$0xff]  ;;  %v342_v56 = vld [vmem:[#allocation5 + $0x18] sm:$0xff] }
  0x69   : > { %657 = vmatpush1.msra.mxu1 %v417_v35  ;;  %497 = vmatprep.subr.mxu0 %v352_v36  ;;  %v407_v55 = vld [vmem:[#allocation5 + $0x220] sm:$0xff]  ;;  %v406_v57 = vld [vmem:[#allocation5 + $0x218] sm:$0xff]  ;;  %v341_v58 = vld [vmem:[#allocation5 + $0x10] sm:$0xff] }
  0x6a   : > { %658 = vmatprep.subr.mxu1 %v416_v37  ;;  %498 = vmatpush1.msra.mxu0 %v351_v38  ;;  %v405_v59 = vld [vmem:[#allocation5 + $0x210] sm:$0xff]  ;;  %v340_v60 = vld [vmem:[#allocation5 + $0x8] sm:$0xff]  ;;  %v339_v62 = vld [vmem:[#allocation5] sm:$0xff] }
  0x6b   : > { %659 = vmatpush1.msra.mxu1 %v415_v39  ;;  %499 = vmatprep.subr.mxu0 %v350_v40  ;;  %v404_v61 = vld [vmem:[#allocation5 + $0x208] sm:$0xff]  ;;  %v403_v63 = vld [vmem:[#allocation5 + $0x200] sm:$0xff]  ;;  %v402_v0 = vld [vmem:[#allocation5 + $0x1f8] sm:$0xff] }
  0x6c   : > { %660 = vmatprep.subr.mxu1 %v414_v41  ;;  %500 = vmatpush1.msra.mxu0 %v349_v42  ;;  %v466_v1 = vld [vmem:[#allocation5 + $0x3f8] sm:$0xff]  ;;  %v401_v2 = vld [vmem:[#allocation5 + $0x1f0] sm:$0xff]  ;;  %v400_v4 = vld [vmem:[#allocation5 + $0x1e8] sm:$0xff] }
  0x6d   : > { %661 = vmatpush1.msra.mxu1 %v413_v43  ;;  %501 = vmatprep.subr.mxu0 %v348_v44  ;;  %v465_v3 = vld [vmem:[#allocation5 + $0x3f0] sm:$0xff]  ;;  %v464_v5 = vld [vmem:[#allocation5 + $0x3e8] sm:$0xff]  ;;  %v399_v6 = vld [vmem:[#allocation5 + $0x1e0] sm:$0xff] }
  0x6e   : > { %662 = vmatprep.subr.mxu1 %v412_v45  ;;  %502 = vmatpush1.msra.mxu0 %v347_v46  ;;  %v463_v7 = vld [vmem:[#allocation5 + $0x3e0] sm:$0xff]  ;;  %v398_v8 = vld [vmem:[#allocation5 + $0x1d8] sm:$0xff]  ;;  %v397_v10 = vld [vmem:[#allocation5 + $0x1d0] sm:$0xff] }
  0x6f   : > { %663 = vmatpush1.msra.mxu1 %v411_v47  ;;  %503 = vmatprep.subr.mxu0 %v346_v48  ;;  %v462_v9 = vld [vmem:[#allocation5 + $0x3d8] sm:$0xff]  ;;  %v461_v11 = vld [vmem:[#allocation5 + $0x3d0] sm:$0xff]  ;;  %v396_v12 = vld [vmem:[#allocation5 + $0x1c8] sm:$0xff] }
  0x70   : > { %664 = vmatprep.subr.mxu1 %v410_v49  ;;  %504 = vmatpush1.msra.mxu0 %v345_v50  ;;  %v460_v13 = vld [vmem:[#allocation5 + $0x3c8] sm:$0xff]  ;;  %v395_v14 = vld [vmem:[#allocation5 + $0x1c0] sm:$0xff]  ;;  %v394_v16 = vld [vmem:[#allocation5 + $0x1b8] sm:$0xff] }
  0x71   : > { %665 = vmatpush1.msra.mxu1 %v409_v51  ;;  %505 = vmatprep.subr.mxu0 %v344_v52  ;;  %v459_v15 = vld [vmem:[#allocation5 + $0x3c0] sm:$0xff]  ;;  %v458_v17 = vld [vmem:[#allocation5 + $0x3b8] sm:$0xff]  ;;  %v393_v18 = vld [vmem:[#allocation5 + $0x1b0] sm:$0xff] }
  0x72   : > { %666 = vmatprep.subr.mxu1 %v408_v53  ;;  %506 = vmatpush1.msra.mxu0 %v343_v54  ;;  %v457_v19 = vld [vmem:[#allocation5 + $0x3b0] sm:$0xff]  ;;  %v392_v20 = vld [vmem:[#allocation5 + $0x1a8] sm:$0xff]  ;;  %v391_v22 = vld [vmem:[#allocation5 + $0x1a0] sm:$0xff] }
  0x73   : > { %667 = vmatpush1.msra.mxu1 %v407_v55  ;;  %507 = vmatprep.subr.mxu0 %v342_v56  ;;  %v456_v21 = vld [vmem:[#allocation5 + $0x3a8] sm:$0xff]  ;;  %v455_v23 = vld [vmem:[#allocation5 + $0x3a0] sm:$0xff]  ;;  %v390_v24 = vld [vmem:[#allocation5 + $0x198] sm:$0xff] }
  0x74   : > { %668 = vmatprep.subr.mxu1 %v406_v57  ;;  %508 = vmatpush1.msra.mxu0 %v341_v58  ;;  %v454_v25 = vld [vmem:[#allocation5 + $0x398] sm:$0xff]  ;;  %v389_v26 = vld [vmem:[#allocation5 + $0x190] sm:$0xff]  ;;  %v388_v28 = vld [vmem:[#allocation5 + $0x188] sm:$0xff] }
  0x75   : > { %669 = vmatpush1.msra.mxu1 %v405_v59  ;;  %509 = vmatprep.subr.mxu0 %v340_v60  ;;  %v453_v27 = vld [vmem:[#allocation5 + $0x390] sm:$0xff]  ;;  %v452_v29 = vld [vmem:[#allocation5 + $0x388] sm:$0xff]  ;;  %v387_v30 = vld [vmem:[#allocation5 + $0x180] sm:$0xff] }
  0x76   : > { %670 = vmatprep.subr.mxu1 %v404_v61  ;;  %510 = vmatpush1.msra.mxu0 %v339_v62  ;;  %v451_v31 = vld [vmem:[#allocation5 + $0x380] sm:$0xff]  ;;  %v386_v32 = vld [vmem:[#allocation5 + $0x178] sm:$0xff]  ;;  %v385_v34 = vld [vmem:[#allocation5 + $0x170] sm:$0xff] }
  0x77   : > { %671 = vmatpush1.msra.mxu1 %v403_v63  ;;  %511 = vmatprep.subr.mxu0 %v402_v0  ;;  %v450_v33 = vld [vmem:[#allocation5 + $0x378] sm:$0xff]  ;;  %v449_v35 = vld [vmem:[#allocation5 + $0x370] sm:$0xff]  ;;  %v384_v36 = vld [vmem:[#allocation5 + $0x168] sm:$0xff] }
  0x78   : > { %672 = vmatprep.subr.mxu1 %v466_v1  ;;  %512 = vmatpush2.msra.mxu0 %v401_v2  ;;  %v448_v37 = vld [vmem:[#allocation5 + $0x368] sm:$0xff]  ;;  %v383_v38 = vld [vmem:[#allocation5 + $0x160] sm:$0xff]  ;;  %v382_v40 = vld [vmem:[#allocation5 + $0x158] sm:$0xff] }
  0x79   : > { %673 = vmatpush2.msra.mxu1 %v465_v3  ;;  %513 = vmatprep.subr.mxu0 %v400_v4  ;;  %v447_v39 = vld [vmem:[#allocation5 + $0x360] sm:$0xff]  ;;  %v446_v41 = vld [vmem:[#allocation5 + $0x358] sm:$0xff]  ;;  %v381_v42 = vld [vmem:[#allocation5 + $0x150] sm:$0xff] }
  0x7a   : > { %674 = vmatprep.subr.mxu1 %v464_v5  ;;  %514 = vmatpush2.msra.mxu0 %v399_v6  ;;  %v445_v43 = vld [vmem:[#allocation5 + $0x350] sm:$0xff]  ;;  %v380_v44 = vld [vmem:[#allocation5 + $0x148] sm:$0xff]  ;;  %v379_v46 = vld [vmem:[#allocation5 + $0x140] sm:$0xff] }
  0x7b   : > { %675 = vmatpush2.msra.mxu1 %v463_v7  ;;  %515 = vmatprep.subr.mxu0 %v398_v8  ;;  %v444_v45 = vld [vmem:[#allocation5 + $0x348] sm:$0xff]  ;;  %v443_v47 = vld [vmem:[#allocation5 + $0x340] sm:$0xff]  ;;  %v378_v48 = vld [vmem:[#allocation5 + $0x138] sm:$0xff] }
  0x7c   : > { %676 = vmatprep.subr.mxu1 %v462_v9  ;;  %516 = vmatpush2.msra.mxu0 %v397_v10  ;;  %v442_v49 = vld [vmem:[#allocation5 + $0x338] sm:$0xff]  ;;  %v377_v50 = vld [vmem:[#allocation5 + $0x130] sm:$0xff]  ;;  %v376_v52 = vld [vmem:[#allocation5 + $0x128] sm:$0xff] }
  0x7d   : > { %677 = vmatpush2.msra.mxu1 %v461_v11  ;;  %517 = vmatprep.subr.mxu0 %v396_v12  ;;  %v441_v51 = vld [vmem:[#allocation5 + $0x330] sm:$0xff]  ;;  %v440_v53 = vld [vmem:[#allocation5 + $0x328] sm:$0xff]  ;;  %v375_v54 = vld [vmem:[#allocation5 + $0x120] sm:$0xff] }
  0x7e   : > { %678 = vmatprep.subr.mxu1 %v460_v13  ;;  %518 = vmatpush2.msra.mxu0 %v395_v14  ;;  %v439_v55 = vld [vmem:[#allocation5 + $0x320] sm:$0xff]  ;;  %v374_v56 = vld [vmem:[#allocation5 + $0x118] sm:$0xff]  ;;  %v373_v58 = vld [vmem:[#allocation5 + $0x110] sm:$0xff] }
  0x7f   : > { %679 = vmatpush2.msra.mxu1 %v459_v15  ;;  %519 = vmatprep.subr.mxu0 %v394_v16  ;;  %v438_v57 = vld [vmem:[#allocation5 + $0x318] sm:$0xff]  ;;  %v437_v59 = vld [vmem:[#allocation5 + $0x310] sm:$0xff]  ;;  %v372_v60 = vld [vmem:[#allocation5 + $0x108] sm:$0xff] }
  0x80   : > { %680 = vmatprep.subr.mxu1 %v458_v17  ;;  %520 = vmatpush2.msra.mxu0 %v393_v18  ;;  %v436_v61 = vld [vmem:[#allocation5 + $0x308] sm:$0xff]  ;;  %v371_v62 = vld [vmem:[#allocation5 + $0x100] sm:$0xff]  ;;  %v278_v1 = vld [vmem:[%s1691_s30 + $0x18] sm:$0xff] }
  0x81   : > { %681 = vmatpush2.msra.mxu1 %v457_v19  ;;  %521 = vmatprep.subr.mxu0 %v392_v20  ;;  %v276_v63 = vld [vmem:[%s1691_s30 + $0x8] sm:$0xff]  ;;  %v435_v0 = vld [vmem:[#allocation5 + $0x300] sm:$0xff]  ;;  %v277_v3 = vld [vmem:[%s1691_s30 + $0x10] sm:$0xff] }
  0x82   : > { %682 = vmatprep.subr.mxu1 %v456_v21  ;;  %522 = vmatpush2.msra.mxu0 %v391_v22  ;;  %v275_v2 = vld [vmem:[%s1691_s30] sm:$0xff]  ;;  %v280_v4 = vld [vmem:[%s1691_s30 + $0x28] sm:$0xff]  ;;  %v282_v5 = vld [vmem:[%s1691_s30 + $0x38] sm:$0xff] }
  0x83   : > { %683 = vmatpush2.msra.mxu1 %v455_v23  ;;  %523 = vmatprep.subr.mxu0 %v390_v24  ;;  %v864_v6 = vld [vmem:[#allocation7 + $0xf8] sm:$0xff]  ;;  %v863_v7 = vld [vmem:[#allocation7 + $0xf0] sm:$0xff]  ;;  %v279_v8 = vld [vmem:[%s1691_s30 + $0x20] sm:$0xff] }
  0x84   : > { %684 = vmatprep.subr.mxu1 %v454_v25  ;;  %524 = vmatpush2.msra.mxu0 %v389_v26  ;;  %v281_v9 = vld [vmem:[%s1691_s30 + $0x30] sm:$0xff]  ;;  %v284_v10 = vld [vmem:[%s1691_s30 + $0x48] sm:$0xff]  ;;  %v286_v11 = vld [vmem:[%s1691_s30 + $0x58] sm:$0xff] }
  0x85   : > { %685 = vmatpush2.msra.mxu1 %v453_v27  ;;  %525 = vmatprep.subr.mxu0 %v388_v28  ;;  %v862_v12 = vld [vmem:[#allocation7 + $0xe8] sm:$0xff]  ;;  %v861_v13 = vld [vmem:[#allocation7 + $0xe0] sm:$0xff]  ;;  %v285_v15 = vld [vmem:[%s1691_s30 + $0x50] sm:$0xff] }
  0x86   : > { %686 = vmatprep.subr.mxu1 %v452_v29  ;;  %526 = vmatpush2.msra.mxu0 %v387_v30  ;;  %v283_v14 = vld [vmem:[%s1691_s30 + $0x40] sm:$0xff]  ;;  %v288_v16 = vld [vmem:[%s1691_s30 + $0x68] sm:$0xff]  ;;  %v290_v17 = vld [vmem:[%s1691_s30 + $0x78] sm:$0xff] }
  0x87   : > { %687 = vmatpush2.msra.mxu1 %v451_v31  ;;  %527 = vmatprep.subr.mxu0 %v386_v32  ;;  %v860_v18 = vld [vmem:[#allocation7 + $0xd8] sm:$0xff]  ;;  %v859_v19 = vld [vmem:[#allocation7 + $0xd0] sm:$0xff]  ;;  %v287_v20 = vld [vmem:[%s1691_s30 + $0x60] sm:$0xff] }
  0x88   : > { %688 = vmatprep.subr.mxu1 %v450_v33  ;;  %528 = vmatpush2.msra.mxu0 %v385_v34  ;;  %v289_v21 = vld [vmem:[%s1691_s30 + $0x70] sm:$0xff]  ;;  %v292_v22 = vld [vmem:[%s1691_s30 + $0x88] sm:$0xff]  ;;  %v294_v23 = vld [vmem:[%s1691_s30 + $0x98] sm:$0xff] }
  0x89   : > { %689 = vmatpush2.msra.mxu1 %v449_v35  ;;  %529 = vmatprep.subr.mxu0 %v384_v36  ;;  %v858_v24 = vld [vmem:[#allocation7 + $0xc8] sm:$0xff]  ;;  %v857_v25 = vld [vmem:[#allocation7 + $0xc0] sm:$0xff]  ;;  %v293_v27 = vld [vmem:[%s1691_s30 + $0x90] sm:$0xff] }
  0x8a   : > { %690 = vmatprep.subr.mxu1 %v448_v37  ;;  %530 = vmatpush2.msra.mxu0 %v383_v38  ;;  %v291_v26 = vld [vmem:[%s1691_s30 + $0x80] sm:$0xff]  ;;  %v296_v28 = vld [vmem:[%s1691_s30 + $0xa8] sm:$0xff]  ;;  %v298_v29 = vld [vmem:[%s1691_s30 + $0xb8] sm:$0xff] }
  0x8b   : > { %691 = vmatpush2.msra.mxu1 %v447_v39  ;;  %531 = vmatprep.subr.mxu0 %v382_v40  ;;  %v856_v30 = vld [vmem:[#allocation7 + $0xb8] sm:$0xff]  ;;  %v855_v31 = vld [vmem:[#allocation7 + $0xb0] sm:$0xff]  ;;  %v295_v32 = vld [vmem:[%s1691_s30 + $0xa0] sm:$0xff] }
  0x8c   : > { %692 = vmatprep.subr.mxu1 %v446_v41  ;;  %532 = vmatpush2.msra.mxu0 %v381_v42  ;;  %v297_v33 = vld [vmem:[%s1691_s30 + $0xb0] sm:$0xff]  ;;  %v300_v34 = vld [vmem:[%s1691_s30 + $0xc8] sm:$0xff]  ;;  %v302_v35 = vld [vmem:[%s1691_s30 + $0xd8] sm:$0xff] }
  0x8d   : > { %693 = vmatpush2.msra.mxu1 %v445_v43  ;;  %533 = vmatprep.subr.mxu0 %v380_v44  ;;  %v854_v36 = vld [vmem:[#allocation7 + $0xa8] sm:$0xff]  ;;  %v853_v37 = vld [vmem:[#allocation7 + $0xa0] sm:$0xff]  ;;  %v301_v39 = vld [vmem:[%s1691_s30 + $0xd0] sm:$0xff] }
  0x8e   : > { %694 = vmatprep.subr.mxu1 %v444_v45  ;;  %534 = vmatpush2.msra.mxu0 %v379_v46  ;;  %v299_v38 = vld [vmem:[%s1691_s30 + $0xc0] sm:$0xff]  ;;  %v304_v40 = vld [vmem:[%s1691_s30 + $0xe8] sm:$0xff]  ;;  %v306_v41 = vld [vmem:[%s1691_s30 + $0xf8] sm:$0xff] }
  0x8f   : > { %695 = vmatpush2.msra.mxu1 %v443_v47  ;;  %535 = vmatprep.subr.mxu0 %v378_v48  ;;  %v852_v42 = vld [vmem:[#allocation7 + $0x98] sm:$0xff]  ;;  %v851_v43 = vld [vmem:[#allocation7 + $0x90] sm:$0xff]  ;;  %v303_v44 = vld [vmem:[%s1691_s30 + $0xe0] sm:$0xff] }
  0x90   : > { %696 = vmatprep.subr.mxu1 %v442_v49  ;;  %536 = vmatpush2.msra.mxu0 %v377_v50  ;;  %v305_v45 = vld [vmem:[%s1691_s30 + $0xf0] sm:$0xff]  ;;  %v308_v46 = vld [vmem:[%s1691_s30 + $0x108] sm:$0xff]  ;;  %v310_v47 = vld [vmem:[%s1691_s30 + $0x118] sm:$0xff] }
  0x91   : > { %697 = vmatpush2.msra.mxu1 %v441_v51  ;;  %537 = vmatprep.subr.mxu0 %v376_v52  ;;  %v850_v48 = vld [vmem:[#allocation7 + $0x88] sm:$0xff]  ;;  %v849_v49 = vld [vmem:[#allocation7 + $0x80] sm:$0xff]  ;;  %v309_v51 = vld [vmem:[%s1691_s30 + $0x110] sm:$0xff] }
  0x92   : > { %698 = vmatprep.subr.mxu1 %v440_v53  ;;  %538 = vmatpush2.msra.mxu0 %v375_v54  ;;  %v307_v50 = vld [vmem:[%s1691_s30 + $0x100] sm:$0xff]  ;;  %v312_v52 = vld [vmem:[%s1691_s30 + $0x128] sm:$0xff]  ;;  %v314_v53 = vld [vmem:[%s1691_s30 + $0x138] sm:$0xff] }
  0x93   : > { %699 = vmatpush2.msra.mxu1 %v439_v55  ;;  %539 = vmatprep.subr.mxu0 %v374_v56  ;;  %v848_v54 = vld [vmem:[#allocation7 + $0x78] sm:$0xff]  ;;  %v847_v55 = vld [vmem:[#allocation7 + $0x70] sm:$0xff]  ;;  %v311_v56 = vld [vmem:[%s1691_s30 + $0x120] sm:$0xff] }
  0x94   : > { %700 = vmatprep.subr.mxu1 %v438_v57  ;;  %540 = vmatpush2.msra.mxu0 %v373_v58  ;;  %v313_v57 = vld [vmem:[%s1691_s30 + $0x130] sm:$0xff]  ;;  %v316_v58 = vld [vmem:[%s1691_s30 + $0x148] sm:$0xff] }
  0x95   : > { %701 = vmatpush2.msra.mxu1 %v437_v59  ;;  %541 = vmatprep.subr.mxu0 %v372_v60  ;;  %v318_v59 = vld [vmem:[%s1691_s30 + $0x158] sm:$0xff]  ;;  %v846_v60 = vld [vmem:[#allocation7 + $0x68] sm:$0xff] }
  0x96   : > { %702 = vmatprep.subr.mxu1 %v436_v61  ;;  %542 = vmatpush2.msra.mxu0 %v371_v62  ;;  %v845_v61 = vld [vmem:[#allocation7 + $0x60] sm:$0xff] }
  0x97   : > { %543 = vmatprep.mubr.f32.mxu0 %v276_v63  ;;  %703 = vmatpush2.msra.mxu1 %v435_v0  ;;  %v315_v62 = vld [vmem:[%s1691_s30 + $0x140] sm:$0xff]  ;;  %v317_v63 = vld [vmem:[%s1691_s30 + $0x150] sm:$0xff]  ;;  %v320_v0 = vld [vmem:[%s1691_s30 + $0x168] sm:$0xff] }
  0x98   : > { %704 = vmatprep.mubr.f32.mxu1 %v278_v1  ;;  %544 = vmatmul.mubr.f32.vlgmr.msra.gmra.mxu0 %v275_v2  ;;  %v322_v1 = vld [vmem:[%s1691_s30 + $0x178] sm:$0xff] }
  0x99   : > { %705 = vmatmul.mubr.f32.vlgmr.msra.gmra.mxu1 %v277_v3  ;;  %549 = vmatprep.mubr.f32.mxu0 %v280_v4  ;;  %v844_v2 = vld [vmem:[#allocation7 + $0x58] sm:$0xff]  ;;  %v843_v3 = vld [vmem:[#allocation7 + $0x50] sm:$0xff]  ;;  %v319_v4 = vld [vmem:[%s1691_s30 + $0x160] sm:$0xff] }
  0x9a   : > { %710 = vmatprep.mubr.f32.mxu1 %v282_v5  ;;  %909 = vmatprep.subr.mxu0 %v864_v6  ;;  %v321_v5 = vld [vmem:[%s1691_s30 + $0x170] sm:$0xff] }
  0x9b   : > { %1233 = vmatprep.subr.mxu1 %v864_v6  ;;  %910 = vmatpush1.msra.mxu0 %v863_v7  ;;  %v324_v6 = vld [vmem:[%s1691_s30 + $0x188] sm:$0xff] }
  0x9c   : > { %1265 = vmatpush1.msra.mxu1 %v863_v7  ;;  %550 = vmatmul.mubr.f32.gmra.mxu0 %v279_v8  ;;  %v326_v7 = vld [vmem:[%s1691_s30 + $0x198] sm:$0xff]  ;;  %v842_v8 = vld [vmem:[#allocation7 + $0x48] sm:$0xff] }
  0x9d   : > { %711 = vmatmul.mubr.f32.gmra.mxu1 %v281_v9  ;;  %555 = vmatprep.mubr.f32.mxu0 %v284_v10  ;;  %v841_v9 = vld [vmem:[#allocation7 + $0x40] sm:$0xff] }
  0x9e   : > { %716 = vmatprep.mubr.f32.mxu1 %v286_v11  ;;  %911 = vmatprep.subr.mxu0 %v862_v12  ;;  %v323_v10 = vld [vmem:[%s1691_s30 + $0x180] sm:$0xff]  ;;  %v325_v11 = vld [vmem:[%s1691_s30 + $0x190] sm:$0xff] }
  0x9f   : > { %1234 = vmatprep.subr.mxu1 %v862_v12  ;;  %912 = vmatpush1.msra.mxu0 %v861_v13  ;;  %v328_v12 = vld [vmem:[%s1691_s30 + $0x1a8] sm:$0xff] }
  0xa0   : > { %1266 = vmatpush1.msra.mxu1 %v861_v13  ;;  %556 = vmatmul.mubr.f32.gmra.mxu0 %v283_v14  ;;  %v330_v13 = vld [vmem:[%s1691_s30 + $0x1b8] sm:$0xff] }
  0xa1   : > { %717 = vmatmul.mubr.f32.gmra.mxu1 %v285_v15  ;;  %561 = vmatprep.mubr.f32.mxu0 %v288_v16  ;;  %v840_v14 = vld [vmem:[#allocation7 + $0x38] sm:$0xff]  ;;  %v839_v15 = vld [vmem:[#allocation7 + $0x30] sm:$0xff]  ;;  %v327_v16 = vld [vmem:[%s1691_s30 + $0x1a0] sm:$0xff] }
  0xa2   : > { %722 = vmatprep.mubr.f32.mxu1 %v290_v17  ;;  %913 = vmatprep.subr.mxu0 %v860_v18  ;;  %v329_v17 = vld [vmem:[%s1691_s30 + $0x1b0] sm:$0xff] }
  0xa3   : > { %1235 = vmatprep.subr.mxu1 %v860_v18  ;;  %914 = vmatpush1.msra.mxu0 %v859_v19  ;;  %v332_v18 = vld [vmem:[%s1691_s30 + $0x1c8] sm:$0xff] }
  0xa4   : > { %1267 = vmatpush1.msra.mxu1 %v859_v19  ;;  %562 = vmatmul.mubr.f32.gmra.mxu0 %v287_v20  ;;  %v334_v19 = vld [vmem:[%s1691_s30 + $0x1d8] sm:$0xff]  ;;  %v838_v20 = vld [vmem:[#allocation7 + $0x28] sm:$0xff] }
  0xa5   : > { %723 = vmatmul.mubr.f32.gmra.mxu1 %v289_v21  ;;  %567 = vmatprep.mubr.f32.mxu0 %v292_v22  ;;  %v837_v21 = vld [vmem:[#allocation7 + $0x20] sm:$0xff] }
  0xa6   : > { %728 = vmatprep.mubr.f32.mxu1 %v294_v23  ;;  %915 = vmatprep.subr.mxu0 %v858_v24  ;;  %v331_v22 = vld [vmem:[%s1691_s30 + $0x1c0] sm:$0xff]  ;;  %v333_v23 = vld [vmem:[%s1691_s30 + $0x1d0] sm:$0xff] }
  0xa7   : > { %1236 = vmatprep.subr.mxu1 %v858_v24  ;;  %916 = vmatpush1.msra.mxu0 %v857_v25  ;;  %v336_v24 = vld [vmem:[%s1691_s30 + $0x1e8] sm:$0xff] }
  0xa8   : > { %1268 = vmatpush1.msra.mxu1 %v857_v25  ;;  %568 = vmatmul.mubr.f32.gmra.mxu0 %v291_v26  ;;  %v338_v25 = vld [vmem:[%s1691_s30 + $0x1f8] sm:$0xff] }
  0xa9   : > { %729 = vmatmul.mubr.f32.gmra.mxu1 %v293_v27  ;;  %573 = vmatprep.mubr.f32.mxu0 %v296_v28  ;;  %v836_v26 = vld [vmem:[#allocation7 + $0x18] sm:$0xff]  ;;  %v835_v27 = vld [vmem:[#allocation7 + $0x10] sm:$0xff]  ;;  %v335_v28 = vld [vmem:[%s1691_s30 + $0x1e0] sm:$0xff] }
  0xaa   : > { %734 = vmatprep.mubr.f32.mxu1 %v298_v29  ;;  %917 = vmatprep.subr.mxu0 %v856_v30  ;;  %v337_v29 = vld [vmem:[%s1691_s30 + $0x1f0] sm:$0xff]  ;;  %s1456_s30 = scalar_lea.vmem %s1455_s29, 8192 }
  0xab   : > { %1237 = vmatprep.subr.mxu1 %v856_v30  ;;  %918 = vmatpush1.msra.mxu0 %v855_v31  ;;  %v834_v30 = vld [vmem:[#allocation7 + $0x8] sm:$0xff]  ;;  %p1458_p12 = scmp.lt.s32.totalorder %s1456_s30, %s1450_s14 }
  0xac   : > { %1269 = vmatpush1.msra.mxu1 %v855_v31  ;;  %574 = vmatmul.mubr.f32.gmra.mxu0 %v295_v32  ;;  %v833_v31 = vld [vmem:[#allocation7] sm:$0xff]  ;;  %v896_v32 = vld [vmem:[#allocation7 + $0x1f8] sm:$0xff] }
  0xad   : > { %735 = vmatmul.mubr.f32.gmra.mxu1 %v297_v33  ;;  %579 = vmatprep.mubr.f32.mxu0 %v300_v34  ;;  %v895_v33 = vld [vmem:[#allocation7 + $0x1f0] sm:$0xff]  ;;  %v894_v34 = vld [vmem:[#allocation7 + $0x1e8] sm:$0xff]  ;;  %p1459_p7 = por %p1458_p12, %p1457_p6 }
  0xae   : > { %740 = vmatprep.mubr.f32.mxu1 %v302_v35  ;;  %919 = vmatprep.subr.mxu0 %v854_v36  ;;  %v893_v35 = vld [vmem:[#allocation7 + $0x1e0] sm:$0xff] }
  0xaf   : > { %1238 = vmatprep.subr.mxu1 %v854_v36  ;;  %920 = vmatpush1.msra.mxu0 %v853_v37  ;;  %v892_v36 = vld [vmem:[#allocation7 + $0x1d8] sm:$0xff]  ;;  %p1460_p9 = pnand %p1459_p7, %p1453_p2 }
  0xb0   : > { %1270 = vmatpush1.msra.mxu1 %v853_v37  ;;  %580 = vmatmul.mubr.f32.gmra.mxu0 %v299_v38  ;;  %v891_v37 = vld [vmem:[#allocation7 + $0x1d0] sm:$0xff]  ;;  %v890_v38 = vld [vmem:[#allocation7 + $0x1c8] sm:$0xff] }
  0xb1   : > { %741 = vmatmul.mubr.f32.gmra.mxu1 %v301_v39  ;;  %585 = vmatprep.mubr.f32.mxu0 %v304_v40  ;;  %v889_v39 = vld [vmem:[#allocation7 + $0x1c0] sm:$0xff]  ;;  %v888_v40 = vld [vmem:[#allocation7 + $0x1b8] sm:$0xff] }
  0xb2   : > { %746 = vmatprep.mubr.f32.mxu1 %v306_v41  ;;  %921 = vmatprep.subr.mxu0 %v852_v42  ;;  %v887_v41 = vld [vmem:[#allocation7 + $0x1b0] sm:$0xff] }
  0xb3   : > { %1239 = vmatprep.subr.mxu1 %v852_v42  ;;  %922 = vmatpush1.msra.mxu0 %v851_v43  ;;  %v886_v42 = vld [vmem:[#allocation7 + $0x1a8] sm:$0xff] }
  0xb4   : > { %1271 = vmatpush1.msra.mxu1 %v851_v43  ;;  %586 = vmatmul.mubr.f32.gmra.mxu0 %v303_v44  ;;  %v885_v43 = vld [vmem:[#allocation7 + $0x1a0] sm:$0xff]  ;;  %v884_v44 = vld [vmem:[#allocation7 + $0x198] sm:$0xff] }
  0xb5   : > { %747 = vmatmul.mubr.f32.gmra.mxu1 %v305_v45  ;;  %591 = vmatprep.mubr.f32.mxu0 %v308_v46  ;;  %v883_v45 = vld [vmem:[#allocation7 + $0x190] sm:$0xff]  ;;  %v882_v46 = vld [vmem:[#allocation7 + $0x188] sm:$0xff] }
  0xb6   : > { %752 = vmatprep.mubr.f32.mxu1 %v310_v47  ;;  %923 = vmatprep.subr.mxu0 %v850_v48  ;;  %v881_v47 = vld [vmem:[#allocation7 + $0x180] sm:$0xff] }
  0xb7   : > { %1240 = vmatprep.subr.mxu1 %v850_v48  ;;  %924 = vmatpush1.msra.mxu0 %v849_v49  ;;  %v880_v48 = vld [vmem:[#allocation7 + $0x178] sm:$0xff] }
  0xb8   : > { %1272 = vmatpush1.msra.mxu1 %v849_v49  ;;  %592 = vmatmul.mubr.f32.gmra.mxu0 %v307_v50  ;;  %v879_v49 = vld [vmem:[#allocation7 + $0x170] sm:$0xff]  ;;  %v878_v50 = vld [vmem:[#allocation7 + $0x168] sm:$0xff] }
  0xb9   : > { %753 = vmatmul.mubr.f32.gmra.mxu1 %v309_v51  ;;  %597 = vmatprep.mubr.f32.mxu0 %v312_v52  ;;  %v877_v51 = vld [vmem:[#allocation7 + $0x160] sm:$0xff]  ;;  %v876_v52 = vld [vmem:[#allocation7 + $0x158] sm:$0xff] }
  0xba   : > { %758 = vmatprep.mubr.f32.mxu1 %v314_v53  ;;  %925 = vmatprep.subr.mxu0 %v848_v54  ;;  %v875_v53 = vld [vmem:[#allocation7 + $0x150] sm:$0xff] }
  0xbb   : > { %1241 = vmatprep.subr.mxu1 %v848_v54  ;;  %926 = vmatpush1.msra.mxu0 %v847_v55  ;;  %v874_v54 = vld [vmem:[#allocation7 + $0x148] sm:$0xff] }
  0xbc   : > { %1273 = vmatpush1.msra.mxu1 %v847_v55  ;;  %598 = vmatmul.mubr.f32.gmra.mxu0 %v311_v56  ;;  %v873_v55 = vld [vmem:[#allocation7 + $0x140] sm:$0xff]  ;;  %v872_v56 = vld [vmem:[#allocation7 + $0x138] sm:$0xff] }
  0xbd   : > { %759 = vmatmul.mubr.f32.gmra.mxu1 %v313_v57  ;;  %603 = vmatprep.mubr.f32.mxu0 %v316_v58  ;;  %v871_v57 = vld [vmem:[#allocation7 + $0x130] sm:$0xff]  ;;  %v870_v58 = vld [vmem:[#allocation7 + $0x128] sm:$0xff] }
  0xbe   : > { %764 = vmatprep.mubr.f32.mxu1 %v318_v59  ;;  %927 = vmatprep.subr.mxu0 %v846_v60  ;;  %v869_v59 = vld [vmem:[#allocation7 + $0x120] sm:$0xff] }
  0xbf   : > { %1242 = vmatprep.subr.mxu1 %v846_v60  ;;  %928 = vmatpush1.msra.mxu0 %v845_v61  ;;  %v868_v60 = vld [vmem:[#allocation7 + $0x118] sm:$0xff] }
  0xc0   : > { %1274 = vmatpush1.msra.mxu1 %v845_v61  ;;  %604 = vmatmul.mubr.f32.gmra.mxu0 %v315_v62  ;;  %v867_v61 = vld [vmem:[#allocation7 + $0x110] sm:$0xff]  ;;  %v866_v62 = vld [vmem:[#allocation7 + $0x108] sm:$0xff] }
  0xc1   : > { %765 = vmatmul.mubr.f32.gmra.mxu1 %v317_v63  ;;  %609 = vmatprep.mubr.f32.mxu0 %v320_v0  ;;  %v865_v63 = vld [vmem:[#allocation7 + $0x100] sm:$0xff]  ;;  %v469_v0 = vlaneseq }
  0xc2   : > { %770 = vmatprep.mubr.f32.mxu1 %v322_v1  ;;  %929 = vmatprep.subr.mxu0 %v844_v2 }
  0xc3   : > { %1243 = vmatprep.subr.mxu1 %v844_v2  ;;  %930 = vmatpush1.msra.mxu0 %v843_v3  ;;  %v1765_v1 = vshrl.u32 %v469_v0, 7 }
  0xc4   : > { %1275 = vmatpush1.msra.mxu1 %v843_v3  ;;  %610 = vmatmul.mubr.f32.gmra.mxu0 %v319_v4  ;;  %v467_v3 = vld [vmem:[%s1942_s2] sm:$0x3] }
  0xc5   : > { %771 = vmatmul.mubr.f32.gmra.mxu1 %v321_v5  ;;  %615 = vmatprep.mubr.f32.mxu0 %v324_v6  ;;  %v471_v2 = vsub.s32 0, %v1765_v1  ;;  %v475_v4 = vsub.s32 1, %v1765_v1 }
  0xc6   : > { %776 = vmatprep.mubr.f32.mxu1 %v326_v7  ;;  %931 = vmatprep.subr.mxu0 %v842_v8 }
  0xc7   : > { %1244 = vmatprep.subr.mxu1 %v842_v8  ;;  %932 = vmatpush1.msra.mxu0 %v841_v9  ;;  %v1774_v5 = vrot.slane %v467_v3, %v471_v2  ;;  %v1778_v6 = vrot.slane %v467_v3, %v475_v4 }
  0xc8   : > { %1276 = vmatpush1.msra.mxu1 %v841_v9  ;;  %616 = vmatmul.mubr.f32.gmra.mxu0 %v323_v10 }
  0xc9   : > { %777 = vmatmul.mubr.f32.gmra.mxu1 %v325_v11  ;;  %621 = vmatprep.mubr.f32.mxu0 %v328_v12 }
  0xca   : > { %782 = vmatprep.mubr.f32.mxu1 %v330_v13  ;;  %933 = vmatprep.subr.mxu0 %v840_v14 }
  0xcb   : > { %1245 = vmatprep.subr.mxu1 %v840_v14  ;;  %934 = vmatpush1.msra.mxu0 %v839_v15 }
  0xcc   : > { %1277 = vmatpush1.msra.mxu1 %v839_v15  ;;  %622 = vmatmul.mubr.f32.gmra.mxu0 %v327_v16 }
  0xcd   : > { %783 = vmatmul.mubr.f32.gmra.mxu1 %v329_v17  ;;  %627 = vmatprep.mubr.f32.mxu0 %v332_v18 }
  0xce   : > { %788 = vmatprep.mubr.f32.mxu1 %v334_v19  ;;  %935 = vmatprep.subr.mxu0 %v838_v20 }
  0xcf   : > { %1246 = vmatprep.subr.mxu1 %v838_v20  ;;  %936 = vmatpush1.msra.mxu0 %v837_v21 }
  0xd0   : > { %1278 = vmatpush1.msra.mxu1 %v837_v21  ;;  %628 = vmatmul.mubr.f32.gmra.mxu0 %v331_v22 }
  0xd1   : > { %789 = vmatmul.mubr.f32.gmra.mxu1 %v333_v23  ;;  %633 = vmatprep.mubr.f32.mxu0 %v336_v24 }
  0xd2   : > { %794 = vmatprep.mubr.f32.mxu1 %v338_v25  ;;  %937 = vmatprep.subr.mxu0 %v836_v26 }
  0xd3   : > { %1247 = vmatprep.subr.mxu1 %v836_v26  ;;  %938 = vmatpush1.msra.mxu0 %v835_v27 }
  0xd4   : > { %1279 = vmatpush1.msra.mxu1 %v835_v27  ;;  %634 = vmatmul.mubr.f32.gmra.mxu0 %v335_v28 }
  0xd5   : > { %795 = vmatmul.mubr.f32.gmra.mxu1 %v337_v29  ;;  %939 = vmatprep.subr.mxu0 %v834_v30 }
  0xd6   : > { %1248 = vmatprep.subr.mxu1 %v834_v30  ;;  %940 = vmatpush1.msra.mxu0 %v833_v31 }
  0xd7   : > { %1280 = vmatpush1.msra.mxu1 %v833_v31  ;;  %941 = vmatprep.subr.mxu0 %v896_v32 }
  0xd8   : > { %1249 = vmatprep.subr.mxu1 %v896_v32  ;;  %942 = vmatpush2.msra.mxu0 %v895_v33 }
  0xd9   : > { %1281 = vmatpush2.msra.mxu1 %v895_v33  ;;  %943 = vmatprep.subr.mxu0 %v894_v34 }
  0xda   : > { %1250 = vmatprep.subr.mxu1 %v894_v34  ;;  %944 = vmatpush2.msra.mxu0 %v893_v35 }
  0xdb   : > { %1282 = vmatpush2.msra.mxu1 %v893_v35  ;;  %945 = vmatprep.subr.mxu0 %v892_v36 }
  0xdc   : > { %1251 = vmatprep.subr.mxu1 %v892_v36  ;;  %946 = vmatpush2.msra.mxu0 %v891_v37 }
  0xdd   : > { %1283 = vmatpush2.msra.mxu1 %v891_v37  ;;  %947 = vmatprep.subr.mxu0 %v890_v38 }
  0xde   : > { %1252 = vmatprep.subr.mxu1 %v890_v38  ;;  %948 = vmatpush2.msra.mxu0 %v889_v39 }
  0xdf   : > { %1284 = vmatpush2.msra.mxu1 %v889_v39  ;;  %949 = vmatprep.subr.mxu0 %v888_v40 }
  0xe0   : > { %1253 = vmatprep.subr.mxu1 %v888_v40  ;;  %950 = vmatpush2.msra.mxu0 %v887_v41 }
  0xe1   : > { %1285 = vmatpush2.msra.mxu1 %v887_v41  ;;  %951 = vmatprep.subr.mxu0 %v886_v42 }
  0xe2   : > { %1254 = vmatprep.subr.mxu1 %v886_v42  ;;  %952 = vmatpush2.msra.mxu0 %v885_v43 }
  0xe3   : > { %1286 = vmatpush2.msra.mxu1 %v885_v43  ;;  %953 = vmatprep.subr.mxu0 %v884_v44 }
  0xe4   : > { %1255 = vmatprep.subr.mxu1 %v884_v44  ;;  %954 = vmatpush2.msra.mxu0 %v883_v45 }
  0xe5   : > { %1287 = vmatpush2.msra.mxu1 %v883_v45  ;;  %955 = vmatprep.subr.mxu0 %v882_v46 }
  0xe6   : > { %1256 = vmatprep.subr.mxu1 %v882_v46  ;;  %956 = vmatpush2.msra.mxu0 %v881_v47 }
  0xe7   : > { %1288 = vmatpush2.msra.mxu1 %v881_v47  ;;  %957 = vmatprep.subr.mxu0 %v880_v48 }
  0xe8   : > { %1257 = vmatprep.subr.mxu1 %v880_v48  ;;  %958 = vmatpush2.msra.mxu0 %v879_v49 }
  0xe9   : > { %1289 = vmatpush2.msra.mxu1 %v879_v49  ;;  %959 = vmatprep.subr.mxu0 %v878_v50 }
  0xea   : > { %1258 = vmatprep.subr.mxu1 %v878_v50  ;;  %960 = vmatpush2.msra.mxu0 %v877_v51 }
  0xeb   : > { %1290 = vmatpush2.msra.mxu1 %v877_v51  ;;  %961 = vmatprep.subr.mxu0 %v876_v52 }
  0xec   : > { %1259 = vmatprep.subr.mxu1 %v876_v52  ;;  %962 = vmatpush2.msra.mxu0 %v875_v53 }
  0xed   : > { %1291 = vmatpush2.msra.mxu1 %v875_v53  ;;  %963 = vmatprep.subr.mxu0 %v874_v54 }
  0xee   : > { %1260 = vmatprep.subr.mxu1 %v874_v54  ;;  %964 = vmatpush2.msra.mxu0 %v873_v55 }
  0xef   : > { %1292 = vmatpush2.msra.mxu1 %v873_v55  ;;  %965 = vmatprep.subr.mxu0 %v872_v56 }
  0xf0   : > { %1261 = vmatprep.subr.mxu1 %v872_v56  ;;  %966 = vmatpush2.msra.mxu0 %v871_v57 }
  0xf1   : > { %1293 = vmatpush2.msra.mxu1 %v871_v57  ;;  %967 = vmatprep.subr.mxu0 %v870_v58 }
  0xf2   : > { %1262 = vmatprep.subr.mxu1 %v870_v58  ;;  %968 = vmatpush2.msra.mxu0 %v869_v59 }
  0xf3   : > { %1294 = vmatpush2.msra.mxu1 %v869_v59  ;;  %969 = vmatprep.subr.mxu0 %v868_v60 }
  0xf4   : > { %1263 = vmatprep.subr.mxu1 %v868_v60  ;;  %970 = vmatpush2.msra.mxu0 %v867_v61 }
  0xf5   : > { %1295 = vmatpush2.msra.mxu1 %v867_v61  ;;  %971 = vmatprep.subr.mxu0 %v866_v62 }
  0xf6   : > { %1264 = vmatprep.subr.mxu1 %v866_v62  ;;  %972 = vmatpush2.msra.mxu0 %v865_v63 }
  0xf7   : > { %1296 = vmatpush2.msra.mxu1 %v865_v63 }
 0x158   : > { %v545_v7 = vpop.f32.mrf.mxu0 }
 0x159   : > { %v706_v8 = vpop.f32.mrf.mxu1  ;;  %v546_v9 = vadd.f32 %v545_v7, %v1774_v5 }
 0x15a   : > { %v547_v10 = vpop.f32.mrf.mxu0 }
 0x15b   : > { %v708_v11 = vpop.f32.mrf.mxu1  ;;  %v548_v12 = vadd.f32 %v547_v10, %v1778_v6  ;;  %v707_v13 = vadd.f32 %v706_v8, %v546_v9 }
 0x15c   : > { %v551_v14 = vpop.f32.mrf.mxu0 }
 0x15d   : > { %v712_v15 = vpop.f32.mrf.mxu1  ;;  %v709_v16 = vadd.f32 %v708_v11, %v548_v12  ;;  %v552_v17 = vadd.f32 %v551_v14, %v1774_v5  ;;  %v801_v22 = vmax.f32 %v707_v13, 0.0 }
 0x15e   : > { %v553_v18 = vpop.f32.mrf.mxu0 }
 0x15f   : > { %v714_v19 = vpop.f32.mrf.mxu1  ;;  %v802_v20 = vmax.f32 %v709_v16, 0.0  ;;  %v554_v21 = vadd.f32 %v553_v18, %v1778_v6  ;;  %v713_v23 = vadd.f32 %v712_v15, %v552_v17 }
 0x160   : > { %v557_v24 = vpop.f32.mrf.mxu0 }
 0x161   : > { %v718_v25 = vpop.f32.mrf.mxu1  ;;  %v715_v26 = vadd.f32 %v714_v19, %v554_v21  ;;  %v558_v27 = vadd.f32 %v557_v24, %v1774_v5  ;;  %973 = vmatprep.mubr.f32.mxu0 %v802_v20  ;;  %v803_v32 = vmax.f32 %v713_v23, 0.0 }
 0x162   : > { %v559_v28 = vpop.f32.mrf.mxu0  ;;  %974 = vmatmul.mubr.f32.vlgmr.msra.gmra.mxu0 %v801_v22 }
 0x163   : > { %v720_v29 = vpop.f32.mrf.mxu1  ;;  %v804_v30 = vmax.f32 %v715_v26, 0.0  ;;  %v560_v31 = vadd.f32 %v559_v28, %v1778_v6  ;;  %v719_v33 = vadd.f32 %v718_v25, %v558_v27 }
 0x164   : > { %v563_v34 = vpop.f32.mrf.mxu0 }
 0x165   : > { %v724_v35 = vpop.f32.mrf.mxu1  ;;  %v721_v36 = vadd.f32 %v720_v29, %v560_v31  ;;  %v564_v37 = vadd.f32 %v563_v34, %v1774_v5  ;;  %979 = vmatprep.mubr.f32.mxu0 %v804_v30  ;;  %v805_v42 = vmax.f32 %v719_v33, 0.0 }
 0x166   : > { %v565_v38 = vpop.f32.mrf.mxu0  ;;  %980 = vmatmul.mubr.f32.gmra.mxu0 %v803_v32 }
 0x167   : > { %v726_v39 = vpop.f32.mrf.mxu1  ;;  %v806_v40 = vmax.f32 %v721_v36, 0.0  ;;  %v566_v41 = vadd.f32 %v565_v38, %v1778_v6  ;;  %v725_v43 = vadd.f32 %v724_v35, %v564_v37 }
 0x168   : > { %v569_v44 = vpop.f32.mrf.mxu0 }
 0x169   : > { %v730_v45 = vpop.f32.mrf.mxu1  ;;  %v727_v46 = vadd.f32 %v726_v39, %v566_v41  ;;  %v570_v47 = vadd.f32 %v569_v44, %v1774_v5  ;;  %985 = vmatprep.mubr.f32.mxu0 %v806_v40  ;;  %v807_v52 = vmax.f32 %v725_v43, 0.0 }
 0x16a   : > { %v571_v48 = vpop.f32.mrf.mxu0  ;;  %986 = vmatmul.mubr.f32.gmra.mxu0 %v805_v42 }
 0x16b   : > { %v732_v49 = vpop.f32.mrf.mxu1  ;;  %v808_v50 = vmax.f32 %v727_v46, 0.0  ;;  %v572_v51 = vadd.f32 %v571_v48, %v1778_v6  ;;  %v731_v53 = vadd.f32 %v730_v45, %v570_v47 }
 0x16c   : > { %v575_v54 = vpop.f32.mrf.mxu0 }
 0x16d   : > { %v736_v55 = vpop.f32.mrf.mxu1  ;;  %v733_v56 = vadd.f32 %v732_v49, %v572_v51  ;;  %v576_v57 = vadd.f32 %v575_v54, %v1774_v5  ;;  %991 = vmatprep.mubr.f32.mxu0 %v808_v50  ;;  %v809_v62 = vmax.f32 %v731_v53, 0.0 }
 0x16e   : > { %v577_v58 = vpop.f32.mrf.mxu0  ;;  %992 = vmatmul.mubr.f32.gmra.mxu0 %v807_v52 }
 0x16f   : > { %v738_v59 = vpop.f32.mrf.mxu1  ;;  %v810_v60 = vmax.f32 %v733_v56, 0.0  ;;  %v578_v61 = vadd.f32 %v577_v58, %v1778_v6  ;;  %v737_v63 = vadd.f32 %v736_v55, %v576_v57 }
 0x170   : > { %v581_v0 = vpop.f32.mrf.mxu0 }
 0x171   : > { %v742_v3 = vpop.f32.mrf.mxu1  ;;  %v739_v7 = vadd.f32 %v738_v59, %v578_v61  ;;  %v582_v8 = vadd.f32 %v581_v0, %v1774_v5  ;;  %997 = vmatprep.mubr.f32.mxu0 %v810_v60  ;;  %v811_v13 = vmax.f32 %v737_v63, 0.0 }
 0x172   : > { %v583_v9 = vpop.f32.mrf.mxu0  ;;  %998 = vmatmul.mubr.f32.gmra.mxu0 %v809_v62 }
 0x173   : > { %v744_v10 = vpop.f32.mrf.mxu1  ;;  %v812_v11 = vmax.f32 %v739_v7, 0.0  ;;  %v584_v12 = vadd.f32 %v583_v9, %v1778_v6  ;;  %v743_v14 = vadd.f32 %v742_v3, %v582_v8 }
 0x174   : > { %v587_v15 = vpop.f32.mrf.mxu0 }
 0x175   : > { %v748_v16 = vpop.f32.mrf.mxu1  ;;  %v745_v17 = vadd.f32 %v744_v10, %v584_v12  ;;  %v588_v18 = vadd.f32 %v587_v15, %v1774_v5  ;;  %1003 = vmatprep.mubr.f32.mxu0 %v812_v11  ;;  %v813_v23 = vmax.f32 %v743_v14, 0.0 }
 0x176   : > { %v589_v19 = vpop.f32.mrf.mxu0  ;;  %1004 = vmatmul.mubr.f32.gmra.mxu0 %v811_v13 }
 0x177   : > { %v750_v20 = vpop.f32.mrf.mxu1  ;;  %v814_v21 = vmax.f32 %v745_v17, 0.0  ;;  %v590_v22 = vadd.f32 %v589_v19, %v1778_v6  ;;  %v749_v24 = vadd.f32 %v748_v16, %v588_v18 }
 0x178   : > { %v593_v25 = vpop.f32.mrf.mxu0 }
 0x179   : > { %v754_v26 = vpop.f32.mrf.mxu1  ;;  %v751_v27 = vadd.f32 %v750_v20, %v590_v22  ;;  %v594_v28 = vadd.f32 %v593_v25, %v1774_v5  ;;  %1009 = vmatprep.mubr.f32.mxu0 %v814_v21  ;;  %v815_v33 = vmax.f32 %v749_v24, 0.0 }
 0x17a   : > { %v595_v29 = vpop.f32.mrf.mxu0  ;;  %1010 = vmatmul.mubr.f32.gmra.mxu0 %v813_v23 }
 0x17b   : > { %v756_v30 = vpop.f32.mrf.mxu1  ;;  %v816_v31 = vmax.f32 %v751_v27, 0.0  ;;  %v596_v32 = vadd.f32 %v595_v29, %v1778_v6  ;;  %v755_v34 = vadd.f32 %v754_v26, %v594_v28 }
 0x17c   : > { %v599_v35 = vpop.f32.mrf.mxu0 }
 0x17d   : > { %v760_v36 = vpop.f32.mrf.mxu1  ;;  %v757_v37 = vadd.f32 %v756_v30, %v596_v32  ;;  %v600_v38 = vadd.f32 %v599_v35, %v1774_v5  ;;  %1015 = vmatprep.mubr.f32.mxu0 %v816_v31  ;;  %v817_v43 = vmax.f32 %v755_v34, 0.0 }
 0x17e   : > { %v601_v39 = vpop.f32.mrf.mxu0  ;;  %1016 = vmatmul.mubr.f32.gmra.mxu0 %v815_v33 }
 0x17f   : > { %v762_v40 = vpop.f32.mrf.mxu1  ;;  %v818_v41 = vmax.f32 %v757_v37, 0.0  ;;  %v602_v42 = vadd.f32 %v601_v39, %v1778_v6  ;;  %v761_v44 = vadd.f32 %v760_v36, %v600_v38 }
 0x180   : > { %v605_v45 = vpop.f32.mrf.mxu0 }
 0x181   : > { %v766_v46 = vpop.f32.mrf.mxu1  ;;  %v763_v47 = vadd.f32 %v762_v40, %v602_v42  ;;  %v606_v48 = vadd.f32 %v605_v45, %v1774_v5  ;;  %1021 = vmatprep.mubr.f32.mxu1 %v818_v41  ;;  %v819_v53 = vmax.f32 %v761_v44, 0.0 }
 0x182   : > { %v607_v49 = vpop.f32.mrf.mxu0  ;;  %1022 = vmatmul.mubr.f32.vlgmr.msra.gmra.mxu1 %v817_v43 }
 0x183   : > { %v768_v50 = vpop.f32.mrf.mxu1  ;;  %v820_v51 = vmax.f32 %v763_v47, 0.0  ;;  %v608_v52 = vadd.f32 %v607_v49, %v1778_v6  ;;  %v767_v54 = vadd.f32 %v766_v46, %v606_v48 }
 0x184   : > { %v611_v55 = vpop.f32.mrf.mxu0 }
 0x185   : > { %v772_v56 = vpop.f32.mrf.mxu1  ;;  %v769_v57 = vadd.f32 %v768_v50, %v608_v52  ;;  %v612_v58 = vadd.f32 %v611_v55, %v1774_v5  ;;  %1027 = vmatprep.mubr.f32.mxu1 %v820_v51  ;;  %v821_v63 = vmax.f32 %v767_v54, 0.0 }
 0x186   : > { %v613_v59 = vpop.f32.mrf.mxu0  ;;  %1028 = vmatmul.mubr.f32.gmra.mxu1 %v819_v53 }
 0x187   : > { %v774_v60 = vpop.f32.mrf.mxu1  ;;  %v822_v61 = vmax.f32 %v769_v57, 0.0  ;;  %v614_v62 = vadd.f32 %v613_v59, %v1778_v6  ;;  %v773_v0 = vadd.f32 %v772_v56, %v612_v58 }
 0x188   : > { %v617_v3 = vpop.f32.mrf.mxu0 }
 0x189   : > { %v778_v7 = vpop.f32.mrf.mxu1  ;;  %v775_v8 = vadd.f32 %v774_v60, %v614_v62  ;;  %v618_v9 = vadd.f32 %v617_v3, %v1774_v5  ;;  %1033 = vmatprep.mubr.f32.mxu1 %v822_v61  ;;  %v823_v14 = vmax.f32 %v773_v0, 0.0 }
 0x18a   : > { %v619_v10 = vpop.f32.mrf.mxu0  ;;  %1034 = vmatmul.mubr.f32.gmra.mxu1 %v821_v63 }
 0x18b   : > { %v780_v11 = vpop.f32.mrf.mxu1  ;;  %v824_v12 = vmax.f32 %v775_v8, 0.0  ;;  %v620_v13 = vadd.f32 %v619_v10, %v1778_v6  ;;  %v779_v15 = vadd.f32 %v778_v7, %v618_v9 }
 0x18c   : > { %v623_v16 = vpop.f32.mrf.mxu0 }
 0x18d   : > { %v784_v17 = vpop.f32.mrf.mxu1  ;;  %v781_v18 = vadd.f32 %v780_v11, %v620_v13  ;;  %v624_v19 = vadd.f32 %v623_v16, %v1774_v5  ;;  %1039 = vmatprep.mubr.f32.mxu1 %v824_v12  ;;  %v825_v24 = vmax.f32 %v779_v15, 0.0 }
 0x18e   : > { %v625_v20 = vpop.f32.mrf.mxu0  ;;  %1040 = vmatmul.mubr.f32.gmra.mxu1 %v823_v14 }
 0x18f   : > { %v786_v21 = vpop.f32.mrf.mxu1  ;;  %v826_v22 = vmax.f32 %v781_v18, 0.0  ;;  %v626_v23 = vadd.f32 %v625_v20, %v1778_v6  ;;  %v785_v25 = vadd.f32 %v784_v17, %v624_v19 }
 0x190   : > { %v629_v26 = vpop.f32.mrf.mxu0 }
 0x191   : > { %v790_v27 = vpop.f32.mrf.mxu1  ;;  %v787_v28 = vadd.f32 %v786_v21, %v626_v23  ;;  %v630_v29 = vadd.f32 %v629_v26, %v1774_v5  ;;  %1045 = vmatprep.mubr.f32.mxu1 %v826_v22  ;;  %v827_v34 = vmax.f32 %v785_v25, 0.0 }
 0x192   : > { %v631_v30 = vpop.f32.mrf.mxu0  ;;  %1046 = vmatmul.mubr.f32.gmra.mxu1 %v825_v24 }
 0x193   : > { %v792_v31 = vpop.f32.mrf.mxu1  ;;  %v828_v32 = vmax.f32 %v787_v28, 0.0  ;;  %v632_v33 = vadd.f32 %v631_v30, %v1778_v6  ;;  %v791_v35 = vadd.f32 %v790_v27, %v630_v29 }
 0x194   : > { %v635_v36 = vpop.f32.mrf.mxu0 }
 0x195   : > { %v796_v37 = vpop.f32.mrf.mxu1  ;;  %v793_v38 = vadd.f32 %v792_v31, %v632_v33  ;;  %v636_v39 = vadd.f32 %v635_v36, %v1774_v5  ;;  %1051 = vmatprep.mubr.f32.mxu1 %v828_v32  ;;  %v829_v43 = vmax.f32 %v791_v35, 0.0  ;;  %v897_v5 = vld [vmem:[%s1944_s4] sm:$0x3] }
 0x196   : > { %v637_v40 = vpop.f32.mrf.mxu0  ;;  %1052 = vmatmul.mubr.f32.gmra.mxu1 %v827_v34  ;;  %v1818_v49 = vrot.slane %v897_v5, %v471_v2 }
 0x197   : > { %v830_v41 = vmax.f32 %v793_v38, 0.0  ;;  %v638_v42 = vadd.f32 %v637_v40, %v1778_v6  ;;  %v797_v44 = vadd.f32 %v796_v37, %v636_v39  ;;  %v798_v45 = vpop.f32.mrf.mxu1  ;;  %v1822_v6 = vrot.slane %v897_v5, %v475_v4 }
 0x199   : > { %v799_v46 = vadd.f32 %v798_v45, %v638_v42  ;;  %1057 = vmatprep.mubr.f32.mxu1 %v830_v41  ;;  %v831_v48 = vmax.f32 %v797_v44, 0.0 }
 0x19a   : > { %1058 = vmatmul.mubr.f32.gmra.mxu1 %v829_v43 }
 0x19b   : > { %v832_v47 = vmax.f32 %v799_v46, 0.0 }
 0x19d   : > { %1063 = vmatprep.mubr.f32.mxu1 %v832_v47 }
 0x19e   : > { %1064 = vmatmul.mubr.f32.gmra.mxu1 %v831_v48 }
 0x222   : > { %v975_v50 = vpop.f32.mrf.mxu0 }
 0x223   : > { %v976_v51 = vadd.f32 %v975_v50, %v1818_v49 }
 0x224   : > { %v977_v52 = vpop.f32.mrf.mxu0 }
 0x225   : > { %1070 = vst [vmem:[%s1825_s12] sm:$0xff] %v976_v51  ;;  %v978_v2 = vadd.f32 %v977_v52, %v1822_v6 }
 0x226   : > { %v981_v53 = vpop.f32.mrf.mxu0 }
 0x227   : > { %1071 = vst [vmem:[%s1825_s12 + $0x8] sm:$0xff] %v978_v2  ;;  %v982_v1 = vadd.f32 %v981_v53, %v1818_v49 }
 0x228   : > { %v983_v4 = vpop.f32.mrf.mxu0 }
 0x229   : > { %1072 = vst [vmem:[%s1825_s12 + $0x10] sm:$0xff] %v982_v1  ;;  %v984_v54 = vadd.f32 %v983_v4, %v1822_v6 }
 0x22a   : > { %v987_v55 = vpop.f32.mrf.mxu0 }
 0x22b   : > { %1073 = vst [vmem:[%s1825_s12 + $0x18] sm:$0xff] %v984_v54  ;;  %v988_v56 = vadd.f32 %v987_v55, %v1818_v49 }
 0x22c   : > { %v989_v57 = vpop.f32.mrf.mxu0 }
 0x22d   : > { %1074 = vst [vmem:[%s1825_s12 + $0x20] sm:$0xff] %v988_v56  ;;  %v990_v58 = vadd.f32 %v989_v57, %v1822_v6 }
 0x22e   : > { %v993_v59 = vpop.f32.mrf.mxu0 }
 0x22f   : > { %1075 = vst [vmem:[%s1825_s12 + $0x28] sm:$0xff] %v990_v58  ;;  %v994_v60 = vadd.f32 %v993_v59, %v1818_v49 }
 0x230   : > { %v995_v61 = vpop.f32.mrf.mxu0 }
 0x231   : > { %1076 = vst [vmem:[%s1825_s12 + $0x30] sm:$0xff] %v994_v60  ;;  %v996_v62 = vadd.f32 %v995_v61, %v1822_v6 }
 0x232   : > { %v999_v63 = vpop.f32.mrf.mxu0 }
 0x233   : > { %1077 = vst [vmem:[%s1825_s12 + $0x38] sm:$0xff] %v996_v62  ;;  %v1000_v0 = vadd.f32 %v999_v63, %v1818_v49 }
 0x234   : > { %v1001_v3 = vpop.f32.mrf.mxu0 }
 0x235   : > { %1078 = vst [vmem:[%s1825_s12 + $0x40] sm:$0xff] %v1000_v0  ;;  %v1002_v7 = vadd.f32 %v1001_v3, %v1822_v6 }
 0x236   : > { %v1005_v8 = vpop.f32.mrf.mxu0 }
 0x237   : > { %1079 = vst [vmem:[%s1825_s12 + $0x48] sm:$0xff] %v1002_v7  ;;  %v1006_v9 = vadd.f32 %v1005_v8, %v1818_v49 }
 0x238   : > { %v1007_v10 = vpop.f32.mrf.mxu0 }
 0x239   : > { %1080 = vst [vmem:[%s1825_s12 + $0x50] sm:$0xff] %v1006_v9  ;;  %v1008_v11 = vadd.f32 %v1007_v10, %v1822_v6 }
 0x23a   : > { %v1011_v12 = vpop.f32.mrf.mxu0 }
 0x23b   : > { %1081 = vst [vmem:[%s1825_s12 + $0x58] sm:$0xff] %v1008_v11  ;;  %v1012_v13 = vadd.f32 %v1011_v12, %v1818_v49 }
 0x23c   : > { %v1013_v14 = vpop.f32.mrf.mxu0 }
 0x23d   : > { %1082 = vst [vmem:[%s1825_s12 + $0x60] sm:$0xff] %v1012_v13  ;;  %v1014_v15 = vadd.f32 %v1013_v14, %v1822_v6 }
 0x23e   : > { %v1017_v16 = vpop.f32.mrf.mxu0 }
 0x23f   : > { %1083 = vst [vmem:[%s1825_s12 + $0x68] sm:$0xff] %v1014_v15  ;;  %v1018_v17 = vadd.f32 %v1017_v16, %v1818_v49 }
 0x240   : > { %v1019_v18 = vpop.f32.mrf.mxu0 }
 0x241   : > { %1084 = vst [vmem:[%s1825_s12 + $0x70] sm:$0xff] %v1018_v17  ;;  %v1020_v19 = vadd.f32 %v1019_v18, %v1822_v6 }
 0x242   : > { %v1023_v20 = vpop.f32.mrf.mxu1 }
 0x243   : > { %1085 = vst [vmem:[%s1825_s12 + $0x78] sm:$0xff] %v1020_v19  ;;  %v1024_v21 = vadd.f32 %v1023_v20, %v1818_v49 }
 0x244   : > { %v1025_v22 = vpop.f32.mrf.mxu1 }
 0x245   : > { %1086 = vst [vmem:[%s1825_s12 + $0x80] sm:$0xff] %v1024_v21  ;;  %v1026_v23 = vadd.f32 %v1025_v22, %v1822_v6 }
 0x246   : > { %v1029_v24 = vpop.f32.mrf.mxu1 }
 0x247   : > { %1087 = vst [vmem:[%s1825_s12 + $0x88] sm:$0xff] %v1026_v23  ;;  %v1030_v25 = vadd.f32 %v1029_v24, %v1818_v49 }
 0x248   : > { %v1031_v26 = vpop.f32.mrf.mxu1 }
 0x249   : > { %1088 = vst [vmem:[%s1825_s12 + $0x90] sm:$0xff] %v1030_v25  ;;  %v1032_v27 = vadd.f32 %v1031_v26, %v1822_v6 }
 0x24a   : > { %v1035_v28 = vpop.f32.mrf.mxu1 }
 0x24b   : > { %1089 = vst [vmem:[%s1825_s12 + $0x98] sm:$0xff] %v1032_v27  ;;  %v1036_v29 = vadd.f32 %v1035_v28, %v1818_v49 }
 0x24c   : > { %v1037_v30 = vpop.f32.mrf.mxu1 }
 0x24d   : > { %1090 = vst [vmem:[%s1825_s12 + $0xa0] sm:$0xff] %v1036_v29  ;;  %v1038_v31 = vadd.f32 %v1037_v30, %v1822_v6 }
 0x24e   : > { %v1041_v32 = vpop.f32.mrf.mxu1 }
 0x24f   : > { %1091 = vst [vmem:[%s1825_s12 + $0xa8] sm:$0xff] %v1038_v31  ;;  %v1042_v33 = vadd.f32 %v1041_v32, %v1818_v49 }
 0x250   : > { %v1043_v34 = vpop.f32.mrf.mxu1 }
 0x251   : > { %1092 = vst [vmem:[%s1825_s12 + $0xb0] sm:$0xff] %v1042_v33  ;;  %v1044_v35 = vadd.f32 %v1043_v34, %v1822_v6 }
 0x252   : > { %v1047_v36 = vpop.f32.mrf.mxu1 }
 0x253   : > { %1093 = vst [vmem:[%s1825_s12 + $0xb8] sm:$0xff] %v1044_v35  ;;  %v1048_v37 = vadd.f32 %v1047_v36, %v1818_v49 }
 0x254   : > { %v1049_v38 = vpop.f32.mrf.mxu1 }
 0x255   : > { %1094 = vst [vmem:[%s1825_s12 + $0xc0] sm:$0xff] %v1048_v37  ;;  %v1050_v39 = vadd.f32 %v1049_v38, %v1822_v6 }
 0x256   : > { %v1053_v40 = vpop.f32.mrf.mxu1 }
 0x257   : > { %1095 = vst [vmem:[%s1825_s12 + $0xc8] sm:$0xff] %v1050_v39  ;;  %v1054_v41 = vadd.f32 %v1053_v40, %v1818_v49 }
 0x258   : > { %v1055_v42 = vpop.f32.mrf.mxu1 }
 0x259   : > { %1096 = vst [vmem:[%s1825_s12 + $0xd0] sm:$0xff] %v1054_v41  ;;  %v1056_v43 = vadd.f32 %v1055_v42, %v1822_v6 }
 0x25a   : > { %v1059_v44 = vpop.f32.mrf.mxu1 }
 0x25b   : > { %1097 = vst [vmem:[%s1825_s12 + $0xd8] sm:$0xff] %v1056_v43  ;;  %v1060_v45 = vadd.f32 %v1059_v44, %v1818_v49 }
 0x25c   : > { %v1061_v46 = vpop.f32.mrf.mxu1 }
 0x25d   : > { %1098 = vst [vmem:[%s1825_s12 + $0xe0] sm:$0xff] %v1060_v45  ;;  %v1062_v47 = vadd.f32 %v1061_v46, %v1822_v6 }
 0x25e   : > { %v1065_v48 = vpop.f32.mrf.mxu1 }
 0x25f   : > { %1099 = vst [vmem:[%s1825_s12 + $0xe8] sm:$0xff] %v1062_v47  ;;  %v1066_v5 = vadd.f32 %v1065_v48, %v1818_v49 }
 0x260   : > { %v1067_v50 = vpop.f32.mrf.mxu1 }
 0x261   : > { %1100 = vst [vmem:[%s1825_s12 + $0xf0] sm:$0xff] %v1066_v5  ;;  %v1068_v51 = vadd.f32 %v1067_v50, %v1822_v6 }
 0x263   : > { %1101 = vst [vmem:[%s1825_s12 + $0xf8] sm:$0xff] %v1068_v51 }
 0x264   : > { %1463 = shalt.err (!%p1460_p9)
}
 0x265   : > { %s1464_s24 = scalar_lea.hbm %s1892_s13, 4096  ;;  %s1468_s10 = scalar_lea.hbm %s1945_s5, 8192 }
 0x266   : > { %p1465_p13 = scmp.ne.s32.totalorder %s1892_s13, %s1464_s24  ;;  %p1469_p4 = scmp.lt.s32.totalorder %s1892_s13, %s1945_s5 }
 0x267   : > { %p1470_p8 = scmp.lt.s32.totalorder %s1468_s10, %s1464_s24 }
 0x268   : > { %p1466_p5 = pnand %p1465_p13, %p1961_p10 }
 0x269   : > { %p1471_p3 = por %p1470_p8, %p1469_p4 }
 0x26a   : > { %p1467_p0 = pneg %p1466_p5 }
 0x26c   : > { %p1472_p11 = pnand %p1471_p3, %p1467_p0 }
 0x26e   : > { %1475 = shalt.err (!%p1472_p11)
}
 0x26f   : > { %s1528_s28 = smov 256   ;;  %s1529_s7 = smov 16  }
 0x270   : > { %1307 = dma.vmem_to_hbm [thread:$0]  (%p1961_p10), %s1894_s6, 4096, %s1892_s13, %s1103_s22, %s1528_s28, %s1528_s28, %s1529_s7  }
 0x271 PF: > { %s1132_s9 = sand.u32 1, %s1506_s18   ;;  %p1962_p1 = scmp.ne.s32.totalorder %s1951_s25, 0 }
 0x272   : > { %p1963_p2 = scmp.ge.s32.totalorder %s1518_s21, 2  ;;  %s1133_s14 = scalar_lea.sflag [#allocation4], %s1132_s9 }
 0x274   : > { %p1321_p6 = pnand %p1963_p2, %p1962_p1 }
 0x276   : > { %p1322_p12 = pneg %p1321_p6 }
 0x278   : > { %1501 = dma.done.wait (%p1322_p12), %s1133_s14, 4096  }
 0x279   : > { %1503 = vsyncadd (%p1322_p12), %s1133_s14, 4294963200  ;;  %p19_p7 = scmp.ge.s32.totalorder %s1632_s15, 4   ;;  %s1964_s18 = smov %s1510_s19 }
 0x27a   : > { %s1965_s19 = smov %s1514_s20  ;;  %s1966_s20 = smov %s1648_s27 }
 0x27b   : > { %s1967_s21 = smov %s1632_s15  ;;  %21 = sbr.rel (!%p19_p7) target bundleno = 6 (0x6), region = 93 }
 0x280   :  { %1138 = vsyncpa [#allocation3], 1 }
 0x281   :  { %1140 = vsyncpa [#allocation3 + $0x1], 1 }
 0x282   :  { %1141 = vsyncpa [#allocation6], 1 }
 0x283   :  { %1142 = vsyncpa [#allocation4], 1 }
 0x284   :  { %1144 = vsyncpa [#allocation4 + $0x1], 1 }

</bundles_post_ra>
